<compile_context>
chip_gen: v7x
topology: tpu7x:2x2x1
jax: 0.10.0
libtpu: 0.0.40
codegen_flags: <defaults>
</compile_context>

<pallas_src>
import random
import numpy as np
import jax
import jax.numpy as jnp
from jax.experimental import pallas as pl
from jax.experimental.pallas import tpu as pltpu


def _round_up(x, m):
    return (x + m - 1) // m * m


def _agg_kernel(idx_ref, ufeat_ref, sfeat_ref, a_self_ref, a_ngh_ref,
                w_self_ref, w_ngh_ref, center_ref, cmask_ref, out_ref):
    TBS = idx_ref.shape[0]          # TB * S flattened gather rows
    U, Fp = ufeat_ref.shape          # padded unique-node count / feature dim
    S = center_ref.shape[0]          # K == S (required by the torch broadcast)
    TB = sfeat_ref.shape[0]

    # ---- neighbor gather:  one-hot(idx) @ unique_node_feat  (MXU, bf16 operands) ----
    # One-hot is built in-register from int32 indices, so the (B, S, U) f32 mask
    # never touches HBM.  Missing/padded neighbors carry idx = -1 and produce an
    # all-zero row, exactly like the zero mask rows in the PyTorch code.
    idx = idx_ref[...]                                                # (TBS, 1) int32
    col = jax.lax.broadcasted_iota(jnp.int32, (TBS, U), 1)
    onehot = (idx == col).astype(jnp.bfloat16)                        # exact 0/1 in bf16
    neigh_flat = jnp.dot(onehot, ufeat_ref[...],
                         preferred_element_type=jnp.float32)          # (TBS, Fp) f32
    neigh = neigh_flat.reshape(TB, S, Fp)                             # last dim kept: free

    sfeat = sfeat_ref[...]                                            # (TB, Fp) f32

    # ---- attention:  att = exp(relu([self | neigh] @ alpha)), normalized over S ----
    # alpha arrives pre-split, so no sub-128-lane slicing happens in-kernel.
    # Feature reductions are kept on VPU+XLU: operands are already vreg-resident and
    # an MXU matvec would need a (TBS,1)->(TB,S) cross-lane relayout to recombine.
    a_self = a_self_ref[...]                                          # (1, Fp)
    a_ngh = a_ngh_ref[...]                                            # (1, Fp)
    logit_self = jnp.sum(sfeat * a_self, axis=1, keepdims=True)       # (TB, 1)
    logit_ngh = jnp.sum(neigh * a_ngh[:, None, :], axis=2)            # (TB, S)
    att = jnp.exp(jnp.maximum(logit_self + logit_ngh, 0.0))           # (TB, S)
    att_norm = att * pl.reciprocal(jnp.sum(att, axis=1, keepdims=True), approx=True)

    # ---- soft cluster weighting.  The PyTorch broadcast (requires K == S) makes
    #      q[b,s,j] = 1/(||neigh[b,s]-center[s]||^2 + 1) independent of the cluster
    #      axis j, so the sum over clusters collapses to a factor of K. ----
    diff = neigh - center_ref[...][None, :, :]                        # (TB, S, Fp)
    q0 = pl.reciprocal(jnp.sum(diff * diff, axis=2) + 1.0, approx=True)   # (TB, S)

    # Fuse attention + cluster weights into ONE 2-D scale -> two (TB,S,Fp) multiplies.
    w_bs = att_norm * (float(S) * q0)                                 # (TB, S)
    neigh_feat = jnp.sum((neigh * cmask_ref[...][None, :, :]) * w_bs[:, :, None],
                         axis=1)                                      # (TB, Fp)

    # ---- final projection + ReLU  (lane-dense: E padded to a multiple of 128) ----
    emb = jnp.dot(sfeat, w_self_ref[...], preferred_element_type=jnp.float32)
    emb = emb + jnp.dot(neigh_feat, w_ngh_ref[...], preferred_element_type=jnp.float32)
    out_ref[...] = jnp.maximum(emb, 0.0)                              # (TB, E_pad)


def clustered_attention_aggregate(neigh_idx, ufeat, sfeat, alpha, weight, center, cmask,
                                  *, batch_tile=None):
    """neigh_idx: (B, S) int32 row indices into ufeat (-1 marks a missing neighbor)."""
    B, S = neigh_idx.shape
    U, F = ufeat.shape
    E = weight.shape[0]
    K = center.shape[0]
    assert K == S, "PyTorch code's broadcast requires k == num_sample"

    # Lane-align every tensor: U, F, E -> multiples of 128 (zero padding is exact).
    Up, Fp, Ep = _round_up(U, 128), _round_up(F, 128), _round_up(E, 128)

    if batch_tile is None:
        # Largest tile that keeps >= 2 parallel grid steps (v7x: 2 TensorCores),
        # provided the gather matmul still gets >= 128 rows per tile.
        batch_tile = B if (B % 2 != 0 or (B // 2) * S < 128) else B // 2
    TB = batch_tile
    assert B % TB == 0
    assert (TB * S) % 8 == 0, "flattened (TB*S, .) blocks must be sublane-aligned"

    def pad2(x, rows, cols):
        return jnp.pad(x, ((0, rows - x.shape[0]), (0, cols - x.shape[1])))

    # bf16 only on the MXU gather operands (0/1 one-hot is exact, feature rounding
    # is far below the 5e-3 tolerance); all VPU / exp math stays f32 (v5e-safe).
    ufeat_p = pad2(ufeat, Up, Fp).astype(jnp.bfloat16)
    sfeat_p = pad2(sfeat, B, Fp)
    center_p = pad2(center, K, Fp)
    cmask_p = pad2(cmask, K, Fp)
    a_self = pad2(alpha[:F].reshape(1, F), 1, Fp)        # alpha pre-split on host
    a_ngh = pad2(alpha[F:].reshape(1, F), 1, Fp)
    w_t = weight.T                                       # (2F, E)
    w_self = pad2(w_t[:F], Fp, Ep)                       # weight pre-split + E padded
    w_ngh = pad2(w_t[F:], Fp, Ep)
    idx_flat = neigh_idx.reshape(B * S, 1).astype(jnp.int32)

    grid_spec = pltpu.PrefetchScalarGridSpec(
        num_scalar_prefetch=0,
        grid=(B // TB,),
        in_specs=[
            pl.BlockSpec((TB * S, 1), lambda i: (i, 0)),   # neighbor indices (tiny int32)
            pl.BlockSpec((Up, Fp), lambda i: (0, 0)),      # unique-node features (bf16, shared)
            pl.BlockSpec((TB, Fp), lambda i: (i, 0)),      # self features
            pl.BlockSpec((1, Fp), lambda i: (0, 0)),       # alpha[:F]
            pl.BlockSpec((1, Fp), lambda i: (0, 0)),       # alpha[F:]
            pl.BlockSpec((Fp, Ep), lambda i: (0, 0)),      # weight.T[:F]
            pl.BlockSpec((Fp, Ep), lambda i: (0, 0)),      # weight.T[F:]
            pl.BlockSpec((K, Fp), lambda i: (0, 0)),       # cluster centers
            pl.BlockSpec((K, Fp), lambda i: (0, 0)),       # cluster feature mask
        ],
        out_specs=pl.BlockSpec((TB, Ep), lambda i: (i, 0)),
    )
    # TODO(synk): for graphs with U in the many-thousands, move ufeat to
    # memory_space=pl.ANY with a one-shot manual copy (or per-row DMA gather) so the
    # grid-invariant block is not double-buffered against v7x's 64 MiB VMEM.
    out = pl.pallas_call(
        _agg_kernel,
        out_shape=jax.ShapeDtypeStruct((B, Ep), jnp.float32),
        grid_spec=grid_spec,
        compiler_params=pltpu.CompilerParams(dimension_semantics=("parallel",)),
    )(idx_flat, ufeat_p, sfeat_p, a_self, a_ngh, w_self, w_ngh, center_p, cmask_p)
    return out[:, :E]                                     # strip the E padding


def _reference(mask, ufeat, sfeat, alpha, weight, center, cmask):
    """Literal NumPy translation of the PyTorch forward (post-sampling part)."""
    B, S, U = mask.shape
    F = ufeat.shape[1]
    K = center.shape[0]
    neigh = np.einsum('bsu,uf->bsf', mask, ufeat)
    self_all = np.broadcast_to(sfeat[:, None, :], (B, S, F))
    catd = np.concatenate([self_all, neigh], axis=2)
    att = np.exp(np.maximum(catd @ alpha, 0.0)[..., 0])
    att_norm = att / att.sum(1, keepdims=True)
    A = np.broadcast_to(neigh[:, :, None, :], (B, S, K, F))
    C = np.broadcast_to(center[None, :, None, :], (B, K, S, F))
    q = 1.0 / (((A - C) ** 2).sum(3) + 1.0)
    M = np.broadcast_to(cmask[None, :, None, :], (B, K, S, F))
    clustered = (A * q[..., None] * M).sum(2)
    neigh_feat = (clustered * att_norm[..., None]).sum(1)
    combined = np.concatenate([sfeat, neigh_feat], axis=1)
    return np.maximum(weight @ combined.T, 0.0).T


if __name__ == "__main__":
    random.seed(0)
    key = jax.random.PRNGKey(0)

    num_nodes_total = 64
    num_sample = 8           # S
    k_clusters = 8           # K (must equal num_sample for the torch broadcast to work)
    feat_dim = 32            # F
    embed_dim = 64           # E
    batch = 32               # B  -> 2 parallel grid steps of TB=16 (TB*S = 128 gather rows)

    # ---- graph neighbor sampling (host Python glue, mirrors the torch forward prologue) ----
    # TODO(synk): random neighbor sampling / set algebra has no Pallas equivalent; done on host.
    adj_lists = {
        n: set(random.sample([m for m in range(num_nodes_total) if m != n], 12))
        for n in range(num_nodes_total)
    }
    nodes = list(range(batch))
    to_neighs = [adj_lists[int(n)] for n in nodes]
    sample_neighs = [
        set(random.sample(sorted(tn), num_sample)) if len(tn) >= num_sample else tn
        for tn in to_neighs
    ]
    unique_nodes_list = sorted(set.union(*sample_neighs))
    unique_nodes = {n: i for i, n in enumerate(unique_nodes_list)}
    U = len(unique_nodes_list)

    # one-hot mask is only needed for the NumPy reference; the kernel consumes int32 indices
    mask_np = np.zeros((batch, num_sample, U), dtype=np.float32)
    idx_np = np.full((batch, num_sample), -1, dtype=np.int32)
    for i, sn in enumerate(sample_neighs):
        for j, n in enumerate(sorted(sn)):
            mask_np[i, j, unique_nodes[n]] = 1.0
            idx_np[i, j] = unique_nodes[n]

    # ---- features & parameters (deterministic, synthetic) ----
    k_feat, k_w, k_a, k_c = jax.random.split(key, 4)
    features = jax.random.normal(k_feat, (num_nodes_total, feat_dim), jnp.float32)
    unique_index = jnp.asarray(unique_nodes_list, dtype=jnp.int32)
    node_index = jnp.asarray(nodes, dtype=jnp.int32)
    ufeat = features[unique_index]      # == neigh_feat(unique_index)
    sfeat = features[node_index]        # == self_feat(node_index)

    bw = float(np.sqrt(6.0 / (embed_dim + 2 * feat_dim)))       # xavier_uniform bound
    weight = jax.random.uniform(k_w, (embed_dim, 2 * feat_dim), jnp.float32, -bw, bw)
    ba = float(np.sqrt(6.0 / (2 * feat_dim + 1)))
    alpha = jax.random.uniform(k_a, (2 * feat_dim, 1), jnp.float32, -ba, ba)
    center = jax.random.normal(k_c, (k_clusters, feat_dim), jnp.float32)
    cmask = jnp.asarray(
        (np.arange(feat_dim)[None, :] // (feat_dim // k_clusters)
         == np.arange(k_clusters)[:, None]).astype(np.float32))

    neigh_idx = jnp.asarray(idx_np)

    out = clustered_attention_aggregate(neigh_idx, ufeat, sfeat, alpha, weight,
                                        center, cmask)
    out = jax.block_until_ready(out)

    ref = _reference(mask_np, np.asarray(ufeat), np.asarray(sfeat),
                     np.asarray(alpha), np.asarray(weight), np.asarray(center),
                     np.asarray(cmask))
    np.testing.assert_allclose(np.asarray(out), ref, rtol=5e-3, atol=5e-3)
    print("KERNEL_OK")
</pallas_src>

<mosaic_0001>
module attributes {stable_mosaic.version = 11 : i64} {
  func.func @_agg_kernel(%arg0: i32, %arg1: memref<128x1xi32, #tpu.memory_space<vmem>>, %arg2: memref<128x128xbf16, #tpu.memory_space<vmem>>, %arg3: memref<16x128xf32, #tpu.memory_space<vmem>>, %arg4: memref<1x128xf32, #tpu.memory_space<vmem>>, %arg5: memref<1x128xf32, #tpu.memory_space<vmem>>, %arg6: memref<128x128xf32, #tpu.memory_space<vmem>>, %arg7: memref<128x128xf32, #tpu.memory_space<vmem>>, %arg8: memref<8x128xf32, #tpu.memory_space<vmem>>, %arg9: memref<8x128xf32, #tpu.memory_space<vmem>>, %arg10: memref<16x128xf32, #tpu.memory_space<vmem>>) attributes {dimension_semantics = [#tpu.dimension_semantics<parallel>], iteration_bounds = array<i64: 2>, scalar_prefetch = 0 : i64, scratch_operands = 0 : i64, tpu.core_type = #tpu.core_type<tc>, window_params = [{transform_indices = @transform_0, window_bounds = array<i64: 128, 1>}, {pipeline_mode = #tpu.pipeline_mode<synchronous>, transform_indices = @transform_1, window_bounds = array<i64: 128, 128>}, {transform_indices = @transform_2, window_bounds = array<i64: 16, 128>}, {pipeline_mode = #tpu.pipeline_mode<synchronous>, transform_indices = @transform_3, window_bounds = array<i64: 1, 128>}, {pipeline_mode = #tpu.pipeline_mode<synchronous>, transform_indices = @transform_4, window_bounds = array<i64: 1, 128>}, {pipeline_mode = #tpu.pipeline_mode<synchronous>, transform_indices = @transform_5, window_bounds = array<i64: 128, 128>}, {pipeline_mode = #tpu.pipeline_mode<synchronous>, transform_indices = @transform_6, window_bounds = array<i64: 128, 128>}, {pipeline_mode = #tpu.pipeline_mode<synchronous>, transform_indices = @transform_7, window_bounds = array<i64: 8, 128>}, {pipeline_mode = #tpu.pipeline_mode<synchronous>, transform_indices = @transform_8, window_bounds = array<i64: 8, 128>}, {transform_indices = @transform_9, window_bounds = array<i64: 16, 128>}]} {
    %c0 = arith.constant 0 : index
    %c0_0 = arith.constant 0 : index
    %0 = vector.load %arg1[%c0, %c0_0] : memref<128x1xi32, #tpu.memory_space<vmem>>, vector<128x1xi32>
    %1 = tpu.iota {dimensions = array<i32: 1>} : vector<128x128xi32>
    %2 = vector.broadcast %0 : vector<128x1xi32> to vector<128x128xi32>
    %3 = arith.cmpi eq, %2, %1 : vector<128x128xi32>
    %4 = arith.extui %3 : vector<128x128xi1> to vector<128x128xi32>
    %5 = arith.sitofp %4 : vector<128x128xi32> to vector<128x128xf32>
    %6 = arith.truncf %5 : vector<128x128xf32> to vector<128x128xbf16>
    %c0_1 = arith.constant 0 : index
    %c0_2 = arith.constant 0 : index
    %7 = vector.load %arg2[%c0_1, %c0_2] : memref<128x128xbf16, #tpu.memory_space<vmem>>, vector<128x128xbf16>
    %cst = arith.constant dense<0.000000e+00> : vector<128x128xf32>
    %8 = tpu.matmul %6, %7, %cst {dimension_numbers = #tpu.dot_dimension_numbers<[1], [0], [0], [1], [0, 0, 1, 1], [], []>} : vector<128x128xbf16>, vector<128x128xbf16>, vector<128x128xf32> -> vector<128x128xf32>
    %9 = vector.shape_cast %8 : vector<128x128xf32> to vector<16x8x128xf32>
    %c0_3 = arith.constant 0 : index
    %c0_4 = arith.constant 0 : index
    %10 = vector.load %arg3[%c0_3, %c0_4] : memref<16x128xf32, #tpu.memory_space<vmem>>, vector<16x128xf32>
    %c0_5 = arith.constant 0 : index
    %c0_6 = arith.constant 0 : index
    %11 = vector.load %arg4[%c0_5, %c0_6] : memref<1x128xf32, #tpu.memory_space<vmem>>, vector<1x128xf32>
    %c0_7 = arith.constant 0 : index
    %c0_8 = arith.constant 0 : index
    %12 = vector.load %arg5[%c0_7, %c0_8] : memref<1x128xf32, #tpu.memory_space<vmem>>, vector<1x128xf32>
    %13 = vector.broadcast %11 : vector<1x128xf32> to vector<16x128xf32>
    %14 = arith.mulf %10, %13 : vector<16x128xf32>
    %cst_9 = arith.constant dense<0.000000e+00> : vector<16xf32>
    %15 = vector.multi_reduction <add>, %14, %cst_9 [1] : vector<16x128xf32> to vector<16xf32>
    %16 = vector.shape_cast %15 : vector<16xf32> to vector<16x1xf32>
    %17 = vector.shape_cast %12 : vector<1x128xf32> to vector<1x1x128xf32>
    %18 = vector.broadcast %17 : vector<1x1x128xf32> to vector<16x8x128xf32>
    %19 = arith.mulf %9, %18 : vector<16x8x128xf32>
    %cst_10 = arith.constant dense<0.000000e+00> : vector<16x8xf32>
    %20 = vector.multi_reduction <add>, %19, %cst_10 [2] : vector<16x8x128xf32> to vector<16x8xf32>
    %21 = vector.broadcast %16 : vector<16x1xf32> to vector<16x8xf32>
    %22 = arith.addf %21, %20 : vector<16x8xf32>
    %cst_11 = arith.constant 0.000000e+00 : f32
    %23 = vector.broadcast %cst_11 : f32 to vector<16x8xf32>
    %24 = arith.maximumf %22, %23 : vector<16x8xf32>
    %25 = math.exp %24 : vector<16x8xf32>
    %cst_12 = arith.constant dense<0.000000e+00> : vector<16xf32>
    %26 = vector.multi_reduction <add>, %25, %cst_12 [1] : vector<16x8xf32> to vector<16xf32>
    %27 = vector.shape_cast %26 : vector<16xf32> to vector<16x1xf32>
    %28 = tpu.reciprocal %27 {approx = true} : vector<16x1xf32> -> vector<16x1xf32>
    %29 = vector.broadcast %28 : vector<16x1xf32> to vector<16x8xf32>
    %30 = arith.mulf %25, %29 : vector<16x8xf32>
    %c0_13 = arith.constant 0 : index
    %c0_14 = arith.constant 0 : index
    %31 = vector.load %arg8[%c0_13, %c0_14] : memref<8x128xf32, #tpu.memory_space<vmem>>, vector<8x128xf32>
    %32 = vector.shape_cast %31 : vector<8x128xf32> to vector<1x8x128xf32>
    %33 = vector.broadcast %32 : vector<1x8x128xf32> to vector<16x8x128xf32>
    %34 = arith.subf %9, %33 : vector<16x8x128xf32>
    %35 = arith.mulf %34, %34 : vector<16x8x128xf32>
    %cst_15 = arith.constant dense<0.000000e+00> : vector<16x8xf32>
    %36 = vector.multi_reduction <add>, %35, %cst_15 [2] : vector<16x8x128xf32> to vector<16x8xf32>
    %cst_16 = arith.constant 1.000000e+00 : f32
    %37 = vector.broadcast %cst_16 : f32 to vector<16x8xf32>
    %38 = arith.addf %36, %37 : vector<16x8xf32>
    %39 = tpu.reciprocal %38 {approx = true} : vector<16x8xf32> -> vector<16x8xf32>
    %cst_17 = arith.constant 8.000000e+00 : f32
    %40 = vector.broadcast %cst_17 : f32 to vector<16x8xf32>
    %41 = arith.mulf %40, %39 : vector<16x8xf32>
    %42 = arith.mulf %30, %41 : vector<16x8xf32>
    %c0_18 = arith.constant 0 : index
    %c0_19 = arith.constant 0 : index
    %43 = vector.load %arg9[%c0_18, %c0_19] : memref<8x128xf32, #tpu.memory_space<vmem>>, vector<8x128xf32>
    %44 = vector.shape_cast %43 : vector<8x128xf32> to vector<1x8x128xf32>
    %45 = vector.broadcast %44 : vector<1x8x128xf32> to vector<16x8x128xf32>
    %46 = arith.mulf %9, %45 : vector<16x8x128xf32>
    %47 = vector.shape_cast %42 : vector<16x8xf32> to vector<16x8x1xf32>
    %48 = vector.broadcast %47 : vector<16x8x1xf32> to vector<16x8x128xf32>
    %49 = arith.mulf %46, %48 : vector<16x8x128xf32>
    %cst_20 = arith.constant dense<0.000000e+00> : vector<16x128xf32>
    %50 = vector.multi_reduction <add>, %49, %cst_20 [1] : vector<16x8x128xf32> to vector<16x128xf32>
    %c0_21 = arith.constant 0 : index
    %c0_22 = arith.constant 0 : index
    %51 = vector.load %arg6[%c0_21, %c0_22] : memref<128x128xf32, #tpu.memory_space<vmem>>, vector<128x128xf32>
    %cst_23 = arith.constant dense<0.000000e+00> : vector<16x128xf32>
    %52 = tpu.matmul %10, %51, %cst_23 {dimension_numbers = #tpu.dot_dimension_numbers<[1], [0], [0], [1], [0, 0, 1, 1], [], []>} : vector<16x128xf32>, vector<128x128xf32>, vector<16x128xf32> -> vector<16x128xf32>
    %c0_24 = arith.constant 0 : index
    %c0_25 = arith.constant 0 : index
    %53 = vector.load %arg7[%c0_24, %c0_25] : memref<128x128xf32, #tpu.memory_space<vmem>>, vector<128x128xf32>
    %cst_26 = arith.constant dense<0.000000e+00> : vector<16x128xf32>
    %54 = tpu.matmul %50, %53, %cst_26 {dimension_numbers = #tpu.dot_dimension_numbers<[1], [0], [0], [1], [0, 0, 1, 1], [], []>} : vector<16x128xf32>, vector<128x128xf32>, vector<16x128xf32> -> vector<16x128xf32>
    %55 = arith.addf %52, %54 : vector<16x128xf32>
    %cst_27 = arith.constant 0.000000e+00 : f32
    %56 = vector.broadcast %cst_27 : f32 to vector<16x128xf32>
    %57 = arith.maximumf %55, %56 : vector<16x128xf32>
    %c0_28 = arith.constant 0 : index
    %c0_29 = arith.constant 0 : index
    %58 = vector.load %arg10[%c0_28, %c0_29] : memref<16x128xf32, #tpu.memory_space<vmem>>, vector<16x128xf32>
    tpu.vector_store %arg10[%c0_28, %c0_29], %57 {strides = array<i32>} : memref<16x128xf32, #tpu.memory_space<vmem>>, vector<16x128xf32>,
    return
  }
  func.func @transform_0(%arg0: i32) -> (i32, i32) {
    %c0_i32 = arith.constant 0 : i32
    %c0_i32_0 = arith.constant 0 : i32
    return %arg0, %c0_i32 : i32, i32
  }
  func.func @transform_1(%arg0: i32) -> (i32, i32) {
    %c0_i32 = arith.constant 0 : i32
    %c0_i32_0 = arith.constant 0 : i32
    %c0_i32_1 = arith.constant 0 : i32
    return %c0_i32, %c0_i32_0 : i32, i32
  }
  func.func @transform_2(%arg0: i32) -> (i32, i32) {
    %c0_i32 = arith.constant 0 : i32
    %c0_i32_0 = arith.constant 0 : i32
    return %arg0, %c0_i32 : i32, i32
  }
  func.func @transform_3(%arg0: i32) -> (i32, i32) {
    %c0_i32 = arith.constant 0 : i32
    %c0_i32_0 = arith.constant 0 : i32
    %c0_i32_1 = arith.constant 0 : i32
    return %c0_i32, %c0_i32_0 : i32, i32
  }
  func.func @transform_4(%arg0: i32) -> (i32, i32) {
    %c0_i32 = arith.constant 0 : i32
    %c0_i32_0 = arith.constant 0 : i32
    %c0_i32_1 = arith.constant 0 : i32
    return %c0_i32, %c0_i32_0 : i32, i32
  }
  func.func @transform_5(%arg0: i32) -> (i32, i32) {
    %c0_i32 = arith.constant 0 : i32
    %c0_i32_0 = arith.constant 0 : i32
    %c0_i32_1 = arith.constant 0 : i32
    return %c0_i32, %c0_i32_0 : i32, i32
  }
  func.func @transform_6(%arg0: i32) -> (i32, i32) {
    %c0_i32 = arith.constant 0 : i32
    %c0_i32_0 = arith.constant 0 : i32
    %c0_i32_1 = arith.constant 0 : i32
    return %c0_i32, %c0_i32_0 : i32, i32
  }
  func.func @transform_7(%arg0: i32) -> (i32, i32) {
    %c0_i32 = arith.constant 0 : i32
    %c0_i32_0 = arith.constant 0 : i32
    %c0_i32_1 = arith.constant 0 : i32
    return %c0_i32, %c0_i32_0 : i32, i32
  }
  func.func @transform_8(%arg0: i32) -> (i32, i32) {
    %c0_i32 = arith.constant 0 : i32
    %c0_i32_0 = arith.constant 0 : i32
    %c0_i32_1 = arith.constant 0 : i32
    return %c0_i32, %c0_i32_0 : i32, i32
  }
  func.func @transform_9(%arg0: i32) -> (i32, i32) {
    %c0_i32 = arith.constant 0 : i32
    %c0_i32_0 = arith.constant 0 : i32
    return %arg0, %c0_i32 : i32, i32
  }
}

</mosaic_0001>

<bundles_post_ra>
// kernel: tpu_custom_call.1
= control target key start
LH: loop header
LB: loop body
LE: loop exit
PB: predicated region body
PF: predicated region fallthrough
CT: control target
= control target key end

     0   :  { %s2921_s0 = inlined_call_operand.vmem [shape: s32[256,1], index: 0, kind: input, shape index: {}]   ;;  %s2922_s1 = inlined_call_operand.hbm [shape: bf16[128,128], index: 1, kind: input, shape index: {}]   ;;  %s2923_s2 = inlined_call_operand.hbm [shape: f32[32,128], index: 2, kind: input, shape index: {}]   ;;  %s2924_s3 = inlined_call_operand.vmem [shape: f32[1,128], index: 3, kind: input, shape index: {}]   ;;  %s2925_s4 = inlined_call_operand.hbm [shape: f32[1,128], index: 4, kind: input, shape index: {}]   ;;  %s2926_s5 = inlined_call_operand.vmem [shape: f32[128,128], index: 5, kind: input, shape index: {}]   ;;  %s2927_s6 = inlined_call_operand.vmem [shape: f32[128,128], index: 6, kind: input, shape index: {}]   ;;  %s2928_s7 = inlined_call_operand.vmem [shape: f32[8,128], index: 7, kind: input, shape index: {}]   ;;  %s2929_s8 = inlined_call_operand.vmem [shape: f32[8,128], index: 8, kind: input, shape index: {}]   ;;  %s2930_s9 = inlined_call_operand.hbm [shape: f32[32,128], index: 9, kind: output, shape index: {}]  }
   0x1   :  { %2941 = sst [smem:[#allocation17_spill]] %s2925_s4 }
   0x2   :  { %2942 = sst [smem:[#allocation18_spill]] %s2930_s9 }
   0x3   :  { %14 = vsyncpa [#allocation3], 0 }
   0x4   :  { %15 = vsyncpa [#allocation6], 0 }
   0x5   :  { %17 = vsyncpa [#allocation6 + $0x1], 0 }
   0x6   :  { %18 = vsyncpa [#allocation4], 0 }
   0x7   :  { %20 = vsyncpa [#allocation4 + $0x1], 0  ;;  %s2302_s30 = smov 0   ;;  %s2304_s10 = smov 0  }
   0x8   :  { %s2306_s11 = smov 0   ;;  %s2308_s12 = smov 0  }
   0x9 LB: > { %2943 = sst [smem:[#allocation13_spill]] %s2226_s30  ;;  %s2323_s13 = sadd.s32 4294967295, %s2238_s12   ;;  %s2238_s12 = sphi %s2308_s12, %s2969_s12   ;;  %s2234_s11 = sphi %s2306_s11, %s2973_s11   ;;  %s2230_s10 = sphi %s2304_s10, %s2972_s10   ;;  %s2226_s30 = sphi %s2302_s30, %s2971_s30  }
   0xa   : > { %s1668_s14 = sadd.s32 4294967294, %s2238_s12   ;;  %s2327_s15 = sadd.s32 1, %s2238_s12  }
   0xb   : > { %2944 = sst [smem:[#allocation14_spill]] %s2327_s15  ;;  %s80_s16 = sadd.s32 1, %s2234_s11 }
   0xc   : > { %s77_s17 = ssub.s32 %s2238_s12, %s2327_s15  ;;  %p87_p0 = scmp.ne.s32.totalorder %s2234_s11, %s2230_s10 }
   0xd   : > { %p78_p1 = scmp.eq.s32.totalorder %s77_s17, 0  ;;  %p88_p2 = scmp.eq.s32.totalorder %s2238_s12, 0 }
   0xe   : > { %p93_p3 = scmp.ne.s32.totalorder %s2230_s10, %s2226_s30  ;;  %p2931_p4 = scmp.eq.s32.totalorder %s2323_s13, 0 }
   0xf   : > { %s2339_s18 = scalar_select %p78_p1, %s2234_s11, %s80_s16  }
  0x10   : > { %p2341_p5 = por %p88_p2, %p87_p0  ;;  %p2347_p6 = por %p2931_p4, %p93_p3 }
  0x11   : > { %2945 = sst [smem:[#allocation15_spill]] %s2339_s18  ;;  %p243_p7 = scmp.eq.s32.totalorder %s2323_s13, 1 }
  0x12   : > { %s2947_s20 = scalar_select %p2347_p6, 1, 0 }
  0x13   : > { %p249_p8 = scmp.eq.s32.totalorder %s1668_s14, 1  ;;  %p1669_p9 = scmp.ge.s32.totalorder %s2238_s12, 1 }
  0x14   : > { %p256_p10 = scmp.lt.s32.totalorder %s2238_s12, 3  ;;  %p2354_p11 = por %p243_p7, %p87_p0 }
  0x15   : > { %p2358_p12 = por %p249_p8, %p93_p3  ;;  %s2240_s24 = smov [#allocation7]  }
  0x16   : > { %s2948_s21 = scalar_select %p2354_p11, 1, 0 }
  0x17   : > { %s2949_s22 = scalar_select %p2358_p12, 1, 0 }
  0x18   : > { %p2362_p13 = pnand %p1669_p9, %p256_p10  ;;  %s285_s25 = sshll.u32 %s2240_s24, 4  ;;  %s286_s25 = int_to_ptr.vmem [resolvable:$true] %s285_s25 }
  0x19   : > { %2950 = sst [smem:[#allocation16_spill]] %s2949_s22  ;;  %p1981_p4 = scmp.lt.s32.totalorder %s2238_s12, 2 }
  0x1a   : > { %s2951_s23 = scalar_select %p2362_p13, 1, 0 }
  0x1b   : > { %p1964_p2 = pneg %p2362_p13  ;;  %p2952_p0 = scmp.eq.s32.totalorder %s2323_s13, 0 }
  0x1c   : > { %p2378_p3 = pnand %p1981_p4, %p2341_p5  ;;  %s2241_s28 = smov [#allocation2]  }
  0x1d   : > { %p2372_p7 = pnand %p1964_p2, %p2952_p0  ;;  %s268_s29 = sshll.u32 %s2241_s28, 4  ;;  %s2382_s29 = int_to_ptr.vmem [resolvable:$true] %s268_s29 }
  0x1e   : > { %s2954_s27 = scalar_select %p2378_p3, 1, 0 }
  0x1f   : > { %s2955_s4 = sld [smem:[#allocation17_spill]]  ;;  %p2080_p9 = pneg %p2372_p7 }
  0x25   : > { %s2078_s17 = scalar_lea.hbm %s2955_s4, 16 }
  0x26   : > { %p2079_p8 = scmp.ne.s32.totalorder %s2955_s4, %s2078_s17  ;;  %p2085_p10 = scmp.lt.u32.totalorder %s2078_s17, %s2955_s4 }
  0x28   : > { %p2081_p4 = pnand %p2080_p9, %p2079_p8 }
  0x2a   : > { %p2082_p5 = pneg %p2081_p4 }
  0x2c   : > { %p2087_p2 = pnand %p2085_p10, %p2082_p5 }
  0x2e   : > { %2090 = shalt.err (!%p2087_p2)
}
  0x2f   : > { %s2091_s28 = scalar_lea.vmem %s286_s25, 16  ;;  %s2098_s18 = scalar_lea.vmem %s286_s25, 32 }
  0x30   : > { %p2092_p0 = scmp.ne.s32.totalorder %s286_s25, %s2091_s28  ;;  %p2099_p11 = scmp.lt.s32.totalorder %s286_s25, %s286_s25 }
  0x31   : > { %p2100_p6 = scmp.lt.s32.totalorder %s2098_s18, %s2091_s28 }
  0x32   : > { %p2094_p1 = pnand %p2092_p0, %p2080_p9 }
  0x33   : > { %p2101_p13 = por %p2100_p6, %p2099_p11 }
  0x34   : > { %p2095_p12 = pneg %p2094_p1 }
  0x36   : > { %p2102_p3 = pnand %p2101_p13, %p2095_p12 }
  0x38   : > { %2105 = shalt.err (!%p2102_p3)
}
  0x39   : > { %1970 = dma.hbm_to_vmem [thread:$0]  (!%p2372_p7), %s2955_s4, 16, %s286_s25, [#allocation6]  }
  0x3a   : > { %s317_s16 = sand.u32 1, %s2238_s12   ;;  %s2106_s19 = scalar_lea.hbm %s2922_s1, 1024 }
  0x3b   : > { %p2107_p1 = scmp.ne.s32.totalorder %s2922_s1, %s2106_s19  ;;  %p2113_p12 = scmp.lt.u32.totalorder %s2106_s19, %s2922_s1 }
  0x3d   : > { %p2109_p6 = pnand %p2107_p1, %p2080_p9 }
  0x3f   : > { %p2110_p11 = pneg %p2109_p6 }
  0x41   : > { %p2115_p13 = pnand %p2113_p12, %p2110_p11 }
  0x43   : > { %2118 = shalt.err (!%p2115_p13)
}
  0x44   : > { %s2119_s25 = scalar_lea.vmem %s2382_s29, 1024  ;;  %p2127_p5 = scmp.lt.s32.totalorder %s2382_s29, %s2382_s29 }
  0x45   : > { %p2120_p3 = scmp.ne.s32.totalorder %s2382_s29, %s2119_s25  ;;  %p2128_p10 = scmp.lt.s32.totalorder %s2119_s25, %s2119_s25 }
  0x47   : > { %p2122_p8 = pnand %p2120_p3, %p2080_p9  ;;  %p2129_p2 = por %p2128_p10, %p2127_p5 }
  0x49   : > { %p2123_p4 = pneg %p2122_p8 }
  0x4b   : > { %p2130_p0 = pnand %p2129_p2, %p2123_p4 }
  0x4d   : > { %2133 = shalt.err (!%p2130_p0)
}
  0x4e   : > { %s2242_s30 = smov 64   ;;  %s2243_s22 = smov 4  }
  0x4f   : > { %1967 = dma.hbm_to_vmem [thread:$0]  (!%p2372_p7), %s2922_s1, 1024, %s2382_s29, [#allocation3], %s2242_s30, %s2242_s30, %s2243_s22  }
  0x50   : > { %s319_s17 = sand.u32 1, %s2234_s11   ;;  %s1730_s19 = sshll.u32 %s2238_s12, 8 }
  0x51   : > { %s1673_s24 = sshll.u32 %s319_s17, 4  ;;  %s2437_s25 = scalar_lea.hbm %s2923_s2, %s1730_s19 }
  0x52   : > { %s321_s4 = scalar_lea.vmem [#allocation5], %s1673_s24  ;;  %s2441_s26 = scalar_lea.sflag [#allocation6], %s317_s16 }
  0x53   : > { %s328_s9 = sshll.u32 %s321_s4, 4  ;;  %s2134_s14 = scalar_lea.hbm %s2437_s25, 256  ;;  %s2439_s9 = int_to_ptr.vmem [resolvable:$true] %s328_s9 }
  0x54   : > { %p2135_p7 = scmp.ne.s32.totalorder %s2437_s25, %s2134_s14  ;;  %p2956_p9 = scmp.ne.s32.totalorder %s2954_s27, 0 }
  0x55   : > { %s2139_s22 = scalar_lea.hbm %s2923_s2, 512  ;;  %p2140_p12 = scmp.lt.u32.totalorder %s2437_s25, %s2923_s2 }
  0x56   : > { %p2136_p1 = pneg %p2956_p9  ;;  %p2141_p13 = scmp.lt.u32.totalorder %s2139_s22, %s2134_s14 }
  0x57   : > { %p2143_p8 = scmp.lt.u32.totalorder %s2134_s14, %s2437_s25 }
  0x58   : > { %p2137_p6 = pnand %p2136_p1, %p2135_p7  ;;  %p2142_p3 = por %p2141_p13, %p2140_p12 }
  0x5a   : > { %p2138_p11 = pneg %p2137_p6  ;;  %p2144_p4 = por %p2143_p8, %p2142_p3 }
  0x5c   : > { %p2145_p5 = pnand %p2144_p4, %p2138_p11 }
  0x5e   : > { %2148 = shalt.err (!%p2145_p5)
}
  0x5f   : > { %s2149_s4 = scalar_lea.vmem %s2439_s9, 256  ;;  %s2244_s16 = smov [#allocation5]  }
  0x60   : > { %p2150_p10 = scmp.ne.s32.totalorder %s2439_s9, %s2149_s4  ;;  %s2154_s24 = sshll.u32 %s2244_s16, 4  ;;  %s2155_s24 = int_to_ptr.vmem [resolvable:$false] %s2154_s24 }
  0x61   : > { %s2156_s19 = scalar_lea.vmem %s2155_s24, 512  ;;  %p2157_p7 = scmp.lt.s32.totalorder %s2439_s9, %s2155_s24 }
  0x62   : > { %p2152_p2 = pnand %p2150_p10, %p2136_p1  ;;  %p2158_p6 = scmp.lt.s32.totalorder %s2156_s19, %s2149_s4 }
  0x64   : > { %p2153_p0 = pneg %p2152_p2  ;;  %p2159_p12 = por %p2158_p6, %p2157_p7 }
  0x66   : > { %p2160_p13 = pnand %p2159_p12, %p2153_p0 }
  0x68   : > { %2163 = shalt.err (!%p2160_p13)
}
  0x69   : > { %s2245_s28 = smov 128   ;;  %s2246_s18 = smov 8  }
  0x6a   : > { %1974 = dma.hbm_to_vmem [thread:$0]  (!%p2956_p9), %s2437_s25, 256, %s2439_s9, %s2441_s26, %s2245_s28, %s2245_s28, %s2246_s18  }
  0x6b   : > { %p2957_p1 = scmp.ne.s32.totalorder %s2951_s23, 0 }
  0x6c   : > { %p2958_p11 = scmp.eq.s32.totalorder (!%p2957_p1), %s2323_s13, 0 }
  0x6d   : > { %340 = sbr.rel (%p2957_p1) target bundleno = 1265 (0x4f1), region = 56 }
  0x74   : > { %2209 = dma.done.wait (%p2958_p11), [#allocation3], 1024   ;;  %p2959_p3 = pmov %p2958_p11 }
  0x75   : > { %s346_s14 = sand.u32 1, %s2323_s13   ;;  %s348_s29 = sand.u32 1, %s2230_s10  }
  0x76   : > { %2211 = vsyncadd (%p2959_p3), [#allocation3], 4294966272  ;;  %s2479_s30 = sshll.u32 %s348_s29, 4  ;;  %s347_s9 = scalar_lea.sflag [#allocation6], %s346_s14 }
  0x77   : > { %s2482_s27 = scalar_lea.vmem [#allocation5], %s2479_s30  ;;  %p2960_p9 = scmp.ne.s32.totalorder %s2947_s20, 0 }
  0x79   : > { %2213 = dma.done.wait (%p2960_p9), %s347_s9, 256  }
  0x7a   : > { %2215 = vsyncadd (%p2960_p9), %s347_s9, 4294967040  ;;  %p2961_p8 = pmov %p2959_p3 }
  0x7b   : > { %p2962_p4 = pmov %p2959_p3 }
  0x7c   : > { %2217 = dma.done.wait (%p2961_p8), [#allocation6], 16  }
  0x7d   : > { %2219 = vsyncadd (%p2962_p4), [#allocation6], 4294967280  ;;  %s1681_s23 = sshll.u32 %s2323_s13, 4  ;;  %v2247_v0 = vmov 0   ;;  %v2029_v7 = vld [vmem:[#allocation2] sm:$0xff]   ;;  %v2030_v8 = vld [vmem:[#allocation2 + $0x8] sm:$0xff]   ;;  %v419_v25 = vlaneseq }
  0x7e   : > { %2028 = vset.pattern.permute.xlu1 %v2247_v0  ;;  %2027 = vset.pattern.permute.xlu0 %v2247_v0  ;;  %p395_p5 = scmp.lt.s32.totalorder %s1681_s23, 31  ;;  %v2031_v11 = vld [vmem:[#allocation2 + $0x10] sm:$0xff]   ;;  %v2032_v14 = vld [vmem:[#allocation2 + $0x18] sm:$0xff]   ;;  %v2033_v17 = vld [vmem:[#allocation2 + $0x20] sm:$0xff]   ;;  %v2248_v31 = vmov 1.0|1.0  }
  0x7f   : > { %1784 = vmatprep.subr.bf16.mxu0 %v2029_v7  ;;  %v2034_v20 = vld [vmem:[#allocation2 + $0x28] sm:$0xff]   ;;  %v2035_v23 = vld [vmem:[#allocation2 + $0x30] sm:$0xff]   ;;  %v2036_v24 = vld [vmem:[#allocation2 + $0x38] sm:$0xff]   ;;  %v2515_v28 = vand.u32 127, %v419_v25  ;;  %s1731_s26 = sshll.u32 %s2323_s13, 8  ;;  %s2963_s20 = sld [smem:[#allocation18_spill]] }
  0x80   : > { %s2975_s23 = smov (!%p395_p5, %s1681_s23), 31  ;;  %1785 = vmatpush3.bf16.msra.mxu0 %v2029_v7  ;;  %v1724_v44 = vld [vmem:[#allocation7] ss:$0 sm:$0xff]  ;;  %p2964_p2 = scmp.ne.s32.totalorder %s2948_s21, 0 }
  0x81   : > { %s1682_s25 = sshll.u32 %s2975_s23, 3  ;;  %1786 = vmatprep.subr.bf16.mxu0 %v2030_v8  ;;  %s393_s23 = scalar_lea.vmem [#allocation8], %s2479_s30 }
  0x82   : > { %s2496_s15 = scalar_lea.vmem %s2921_s0, %s1682_s25  ;;  %s1562_s25 = sshll.u32 %s393_s23, 4  ;;  %s2870_s25 = int_to_ptr.vmem [resolvable:$true] %s1562_s25 }
  0x83   : > { %v405_v1 = vld [vmem:[%s2496_s15 + $0x10] sm:$0xff]  ;;  %v403_v2 = vld [vmem:[%s2496_s15] sm:$0xff]  ;;  %v406_v3 = vld [vmem:[%s2496_s15 + $0x18] sm:$0xff]  ;;  %s2879_s30 = scalar_lea.sflag [#allocation4], %s348_s29  ;;  %s2164_s13 = scalar_lea.vmem %s2870_s25, 256 }
  0x84   : > { %428 = vperm.xlu1 %2028, %v405_v1   ;;  %422 = vperm.xlu0 %2027, %v403_v2   ;;  %v404_v4 = vld [vmem:[%s2496_s15 + $0x8] sm:$0xff]  ;;  %v407_v6 = vld [vmem:[%s2496_s15 + $0x20] sm:$0xff]  ;;  %v410_v9 = vld [vmem:[%s2496_s15 + $0x38] sm:$0xff]  ;;  %p2165_p10 = scmp.ne.s32.totalorder %s2870_s25, %s2164_s13 }
  0x85   : > { %v408_v5 = vld [vmem:[%s2496_s15 + $0x28] sm:$0xff]  ;;  %v409_v10 = vld [vmem:[%s2496_s15 + $0x30] sm:$0xff]  ;;  %v411_v13 = vld [vmem:[%s2496_s15 + $0x40] sm:$0xff]  ;;  %1787 = vmatpush3.bf16.msra.mxu0 %v2030_v8  ;;  %s2875_s17 = scalar_lea.hbm %s2963_s20, %s1731_s26 }
  0x86   : > { %v412_v12 = vld [vmem:[%s2496_s15 + $0x48] sm:$0xff]  ;;  %1788 = vmatprep.subr.bf16.mxu0 %v2031_v11  ;;  %v414_v15 = vld [vmem:[%s2496_s15 + $0x58] sm:$0xff]  ;;  %v413_v16 = vld [vmem:[%s2496_s15 + $0x50] sm:$0xff]  ;;  %p2166_p0 = pnand %p2165_p10, %p2964_p2 }
  0x87   : > { %v416_v18 = vld [vmem:[%s2496_s15 + $0x68] sm:$0xff]  ;;  %v415_v19 = vld [vmem:[%s2496_s15 + $0x60] sm:$0xff]  ;;  %v418_v21 = vld [vmem:[%s2496_s15 + $0x78] sm:$0xff] }
  0x88   : > { %431 = vperm.xlu1 %2028, %v406_v3   ;;  %425 = vperm.xlu0 %2027, %v404_v4   ;;  %v417_v22 = vld [vmem:[%s2496_s15 + $0x70] sm:$0xff]  ;;  %p2167_p7 = pneg %p2166_p0 }
  0x89   : > { %1789 = vmatpush3.bf16.msra.mxu0 %v2031_v11  ;;  %v1723_v11 = vld [vmem:[%s2924_s3] ss:$0 sm:$0xff] }
  0x8a   : > { %1790 = vmatprep.subr.bf16.mxu0 %v2032_v14 }
  0x8c   : > { %437 = vperm.xlu1 %2028, %v408_v5   ;;  %434 = vperm.xlu0 %2027, %v407_v6  }
  0x8d   : > { %1791 = vmatpush3.bf16.msra.mxu0 %v2032_v14 }
  0x8e   : > { %1792 = vmatprep.subr.bf16.mxu0 %v2033_v17 }
  0x90   : > { %443 = vperm.xlu1 %2028, %v410_v9   ;;  %440 = vperm.xlu0 %2027, %v409_v10   ;;  %v687_v10 = vld [vmem:[%s2482_s27 + $0x8] sm:$0xff] }
  0x91   : > { %1793 = vmatpush3.bf16.msra.mxu0 %v2033_v17  ;;  %v697_v14 = vmul.f32 %v1723_v11, %v687_v10 }
  0x92   : > { %1794 = vmatprep.subr.bf16.mxu0 %v2034_v20 }
  0x94   : > { %449 = vperm.xlu1 %2028, %v412_v12   ;;  %446 = vperm.xlu0 %2027, %v411_v13  }
  0x95   : > { %1795 = vmatpush3.bf16.msra.mxu0 %v2034_v20 }
  0x96   : > { %1796 = vmatprep.subr.bf16.mxu0 %v2035_v23 }
  0x98   : > { %455 = vperm.xlu1 %2028, %v414_v15   ;;  %452 = vperm.xlu0 %2027, %v413_v16   ;;  %v878_v15 = vld [vmem:[%s2928_s7] sm:$0xff] }
  0x99   : > { %1797 = vmatpush3.bf16.msra.mxu0 %v2035_v23  ;;  %v2588_v16 = vld [vmem:[%s2482_s27] sm:$0xff] }
  0x9a   : > { %1798 = vmatprep.subr.bf16.mxu0 %v2036_v24 }
  0x9c   : > { %461 = vperm.xlu1 %2028, %v416_v18   ;;  %458 = vperm.xlu0 %2027, %v415_v19   ;;  %v696_v19 = vmul.f32 %v1723_v11, %v2588_v16 }
  0x9d   : > { %1799 = vmatpush3.bf16.msra.mxu0 %v2036_v24 }
  0xa0   : > { %467 = vperm.xlu1 %2028, %v418_v21   ;;  %464 = vperm.xlu0 %2027, %v417_v22  }
 0x103   : > { %v429_v26 = vpop.permute.xlu1 %428  ;;  %v423_v27 = vpop.permute.xlu0 %422 }
 0x104   : > { %vm471_vm0 = vcmp.eq.s32.totalorder %v429_v26, %v2515_v28  ;;  %vm469_vm3 = vcmp.eq.s32.totalorder %v423_v27, %v2515_v28 }
 0x107   : > { %v432_v29 = vpop.permute.xlu1 %431  ;;  %v426_v30 = vpop.permute.xlu0 %425 }
 0x108   : > { %vm472_vm1 = vcmp.eq.s32.totalorder %v432_v29, %v2515_v28  ;;  %vm470_vm2 = vcmp.eq.s32.totalorder %v426_v30, %v2515_v28 }
 0x109   : > { %vm1709_vm4 = vmpackc.low %vm472_vm1, %vm471_vm0 }
 0x10a   : > { %vm1707_vm5 = vmpackc.low %vm470_vm2, %vm469_vm3 }
 0x10b   : > { %1800 = vmatprep.mubr.msk.bf16.mxu0 %vm1707_vm5, %v2248_v31  ;;  %v438_v32 = vpop.permute.xlu1 %437  ;;  %v435_v33 = vpop.permute.xlu0 %434 }
 0x10c   : > { %vm474_vm6 = vcmp.eq.s32.totalorder %v438_v32, %v2515_v28  ;;  %1801 = vmatmul.mubr.msk.bf16.vlgmr.msra.gmra.mrb[0].mxu0 %vm1709_vm4, %v2248_v31  ;;  %vm473_vm7 = vcmp.eq.s32.totalorder %v435_v33, %v2515_v28 }
 0x10d   : > { %vm1711_vm8 = vmpackc.low %vm474_vm6, %vm473_vm7 }
 0x10e   : > { %1804 = vmatprep.mubr.msk.bf16.mxu0 %vm1711_vm8, %v2248_v31  ;;  %vm836_vm8 = vcmask 1041409  }
 0x10f   : > { %v444_v34 = vpop.permute.xlu1 %443  ;;  %v441_v35 = vpop.permute.xlu0 %440 }
 0x110   : > { %vm476_vm9 = vcmp.eq.s32.totalorder %v444_v34, %v2515_v28  ;;  %vm475_vm10 = vcmp.eq.s32.totalorder %v441_v35, %v2515_v28 }
 0x111   : > { %vm1713_vm11 = vmpackc.low %vm476_vm9, %vm475_vm10  ;;  %vm838_vm9 = vcmask 1042434   ;;  %vm840_vm10 = vcmask 1043459  }
 0x113   : > { %v450_v36 = vpop.permute.xlu1 %449  ;;  %v447_v37 = vpop.permute.xlu0 %446 }
 0x114   : > { %vm478_vm12 = vcmp.eq.s32.totalorder %v450_v36, %v2515_v28  ;;  %1805 = vmatmul.mubr.msk.bf16.gmra.mrb[4].mxu0 %vm1713_vm11, %v2248_v31  ;;  %vm477_vm13 = vcmp.eq.s32.totalorder %v447_v37, %v2515_v28  ;;  %vm842_vm11 = vcmask 1044484  }
 0x115   : > { %vm1715_vm14 = vmpackc.low %vm478_vm12, %vm477_vm13  ;;  %vm844_vm12 = vcmask 1045509   ;;  %vm846_vm13 = vcmask 1046534  }
 0x116   : > { %1808 = vmatprep.mubr.msk.bf16.mxu0 %vm1715_vm14, %v2248_v31  ;;  %vm848_vm14 = vcmask 1047559  }
 0x117   : > { %v456_v38 = vpop.permute.xlu1 %455  ;;  %v453_v39 = vpop.permute.xlu0 %452 }
 0x118   : > { %vm480_vm15 = vcmp.eq.s32.totalorder %v456_v38, %v2515_v28  ;;  %vm479_vm0 = vcmp.eq.s32.totalorder %v453_v39, %v2515_v28 }
 0x119   : > { %vm1717_vm1 = vmpackc.low %vm480_vm15, %vm479_vm0  ;;  %vm867_vm15 = vcmask 64512  }
 0x11b   : > { %v462_v40 = vpop.permute.xlu1 %461  ;;  %v459_v41 = vpop.permute.xlu0 %458 }
 0x11c   : > { %vm482_vm2 = vcmp.eq.s32.totalorder %v462_v40, %v2515_v28  ;;  %1809 = vmatmul.mubr.msk.bf16.gmra.mrb[8].mxu0 %vm1717_vm1, %v2248_v31  ;;  %vm481_vm3 = vcmp.eq.s32.totalorder %v459_v41, %v2515_v28 }
 0x11d   : > { %vm1719_vm4 = vmpackc.low %vm482_vm2, %vm481_vm3 }
 0x11e   : > { %1812 = vmatprep.mubr.msk.bf16.mxu0 %vm1719_vm4, %v2248_v31 }
 0x11f   : > { %v468_v42 = vpop.permute.xlu1 %467  ;;  %v465_v43 = vpop.permute.xlu0 %464 }
 0x120   : > { %vm484_vm5 = vcmp.eq.s32.totalorder %v468_v42, %v2515_v28  ;;  %vm483_vm6 = vcmp.eq.s32.totalorder %v465_v43, %v2515_v28 }
 0x121   : > { %vm1721_vm7 = vmpackc.low %vm484_vm5, %vm483_vm6 }
 0x124   : > { %1813 = vmatmul.mubr.msk.bf16.gmra.mrb[12].mxu0 %vm1721_vm7, %v2248_v31 }
 0x1df   : > { %v2533_v45 = vpop.f32.mrb[0].mxu0 }
 0x1e0   : > { %v2535_v46 = vpop.f32.mrb[1].mxu0  ;;  %v710_v47 = vmul.f32 %v2533_v45, %v1724_v44  ;;  %v881_v27 = vsub.f32 %v2533_v45, %v878_v15 }
 0x1e1   : > { %v2538_v48 = vpop.f32.mrb[2].mxu0  ;;  %v708_v51 = vmul.f32 %v1724_v44, %v2535_v46  ;;  %v879_v22 = vsub.f32 %v2535_v46, %v878_v15 }
 0x1e2   : > { %728 = vadd.xlane.f32.xlu0 %v710_v47  ;;  %v2540_v49 = vpop.f32.mrb[3].mxu0  ;;  %v711_v54 = vmul.f32 %v2538_v48, %v1724_v44  ;;  %v882_v26 = vsub.f32 %v2538_v48, %v878_v15  ;;  %v897_v30 = vmul.f32 %v881_v27, %v881_v27 }
 0x1e3   : > { %v709_v50 = vmul.f32 %v1724_v44, %v2540_v49  ;;  %v880_v18 = vsub.f32 %v2540_v49, %v878_v15  ;;  %v895_v24 = vmul.f32 %v879_v22, %v879_v22 }
 0x1e4   : > { %v898_v29 = vmul.f32 %v882_v26, %v882_v26 }
 0x1e5   : > { %726 = vadd.xlane.f32.xlu1 %v709_v50  ;;  %v896_v20 = vmul.f32 %v880_v18, %v880_v18 }
 0x1e6   : > { %724 = vadd.xlane.f32.xlu0 %v708_v51 }
 0x1e7   : > { %v2544_v52 = vpop.f32.mrb[4].mxu0 }
 0x1e8   : > { %v2546_v53 = vpop.f32.mrb[5].mxu0  ;;  %v714_v57 = vmul.f32 %v2544_v52, %v1724_v44  ;;  %v885_v39 = vsub.f32 %v2544_v52, %v878_v15 }
 0x1e9   : > { %v2549_v55 = vpop.f32.mrb[6].mxu0  ;;  %v712_v60 = vmul.f32 %v1724_v44, %v2546_v53  ;;  %v883_v31 = vsub.f32 %v2546_v53, %v878_v15 }
 0x1ea   : > { %730 = vadd.xlane.f32.xlu0 %v711_v54  ;;  %v2551_v56 = vpop.f32.mrb[7].mxu0  ;;  %v715_v8 = vmul.f32 %v2549_v55, %v1724_v44  ;;  %v901_v41 = vmul.f32 %v885_v39, %v885_v39  ;;  %v886_v43 = vsub.f32 %v2549_v55, %v878_v15 }
 0x1eb   : > { %v713_v0 = vmul.f32 %v1724_v44, %v2551_v56  ;;  %v899_v33 = vmul.f32 %v883_v31, %v883_v31  ;;  %v884_v35 = vsub.f32 %v2551_v56, %v878_v15 }
 0x1ec   : > { %v902_v50 = vmul.f32 %v886_v43, %v886_v43 }
 0x1ed   : > { %v900_v37 = vmul.f32 %v884_v35, %v884_v35 }
 0x1ee   : > { %736 = vadd.xlane.f32.xlu0 %v714_v57 }
 0x1ef   : > { %v2554_v58 = vpop.f32.mrb[8].mxu0 }
 0x1f0   : > { %v2556_v59 = vpop.f32.mrb[9].mxu0  ;;  %v718_v61 = vmul.f32 %v2554_v58, %v1724_v44  ;;  %v889_v36 = vsub.f32 %v2554_v58, %v878_v15 }
 0x1f1   : > { %v2560_v62 = vpop.f32.mrb[10].mxu0  ;;  %v716_v4 = vmul.f32 %v1724_v44, %v2556_v59  ;;  %v887_v21 = vsub.f32 %v2556_v59, %v878_v15 }
 0x1f2   : > { %732 = vadd.xlane.f32.xlu0 %v712_v60  ;;  %744 = vadd.xlane.f32.xlu1 %v718_v61  ;;  %v2562_v63 = vpop.f32.mrb[11].mxu0  ;;  %v719_v1 = vmul.f32 %v2560_v62, %v1724_v44  ;;  %v905_v38 = vmul.f32 %v889_v36, %v889_v36  ;;  %v890_v40 = vsub.f32 %v2560_v62, %v878_v15 }
 0x1f3   : > { %v717_v5 = vmul.f32 %v1724_v44, %v2562_v63  ;;  %v903_v23 = vmul.f32 %v887_v21, %v887_v21  ;;  %v888_v32 = vsub.f32 %v2562_v63, %v878_v15 }
 0x1f4   : > { %v906_v42 = vmul.f32 %v890_v40, %v890_v40 }
 0x1f5   : > { %v904_v34 = vmul.f32 %v888_v32, %v888_v32 }
 0x1f6   : > { %734 = vadd.xlane.f32.xlu0 %v713_v0  ;;  %746 = vadd.xlane.f32.xlu1 %v719_v1 }
 0x1f7   : > { %v2566_v2 = vpop.f32.mrb[12].mxu0 }
 0x1f8   : > { %v2568_v3 = vpop.f32.mrb[13].mxu0  ;;  %v722_v9 = vmul.f32 %v2566_v2, %v1724_v44  ;;  %v893_v61 = vsub.f32 %v2566_v2, %v878_v15 }
 0x1f9   : > { %v2572_v6 = vpop.f32.mrb[14].mxu0  ;;  %v720_v12 = vmul.f32 %v1724_v44, %v2568_v3 }
 0x1fa   : > { %740 = vadd.xlane.f32.xlu0 %v716_v4  ;;  %742 = vadd.xlane.f32.xlu1 %v717_v5  ;;  %v2574_v7 = vpop.f32.mrb[15].mxu0  ;;  %v723_v13 = vmul.f32 %v2572_v6, %v1724_v44  ;;  %v894_v54 = vsub.f32 %v2572_v6, %v878_v15  ;;  %v909_v0 = vmul.f32 %v893_v61, %v893_v61 }
 0x1fb   : > { %v721_v17 = vmul.f32 %v1724_v44, %v2574_v7  ;;  %v891_v44 = vsub.f32 %v2568_v3, %v878_v15  ;;  %v892_v47 = vsub.f32 %v2574_v7, %v878_v15 }
 0x1fc   : > { %v910_v57 = vmul.f32 %v894_v54, %v894_v54 }
 0x1fd   : > { %v907_v51 = vmul.f32 %v891_v44, %v891_v44  ;;  %v908_v60 = vmul.f32 %v892_v47, %v892_v47 }
 0x1fe   : > { %738 = vadd.xlane.f32.xlu0 %v715_v8  ;;  %752 = vadd.xlane.f32.xlu1 %v722_v9 }
 0x202   : > { %748 = vadd.xlane.f32.xlu1 %v720_v12  ;;  %754 = vadd.xlane.f32.xlu0 %v723_v13  ;;  %v2609_v12 = vshrl.u32 %v419_v25, 7 }
 0x206   : > { %700 = vadd.xlane.f32.xlu0 %v697_v14  ;;  %750 = vadd.xlane.f32.xlu1 %v721_v17  ;;  %v2613_v17 = vsub.s32 %v2515_v28, %v2609_v12 }
 0x20a   : > { %913 = vadd.xlane.f32.xlu0 %v896_v20  ;;  %698 = vadd.xlane.f32.xlu1 %v696_v19 }
 0x20e   : > { %927 = vadd.xlane.f32.xlu0 %v903_v23  ;;  %911 = vadd.xlane.f32.xlu1 %v895_v24 }
 0x212   : > { %917 = vadd.xlane.f32.xlu0 %v898_v29  ;;  %915 = vadd.xlane.f32.xlu1 %v897_v30 }
 0x216   : > { %919 = vadd.xlane.f32.xlu0 %v899_v33  ;;  %929 = vadd.xlane.f32.xlu1 %v904_v34 }
 0x21a   : > { %921 = vadd.xlane.f32.xlu0 %v900_v37  ;;  %931 = vadd.xlane.f32.xlu1 %v905_v38 }
 0x21e   : > { %923 = vadd.xlane.f32.xlu0 %v901_v41  ;;  %933 = vadd.xlane.f32.xlu1 %v906_v42 }
 0x222   : > { %925 = vadd.xlane.f32.xlu0 %v902_v50  ;;  %935 = vadd.xlane.f32.xlu1 %v907_v51 }
 0x226   : > { %941 = vadd.xlane.f32.xlu0 %v910_v57  ;;  %937 = vadd.xlane.f32.xlu1 %v908_v60 }
 0x22a   : > { %939 = vadd.xlane.f32.xlu1 %v909_v0 }
 0x26f   : > { %v729_v1 = vpop.xlane.xlu0 %728 }
 0x270   : > { %v783_v28 = vrot.slane %v729_v1, %v2613_v17 }
 0x272   : > { %v727_v8 = vpop.xlane.xlu1 %726 }
 0x273   : > { %v725_v4 = vpop.xlane.xlu0 %724  ;;  %v779_v19 = vrot.slane %v727_v8, %v2613_v17 }
 0x274   : > { %v775_v20 = vrot.slane %v725_v4, %v2613_v17 }
 0x276   : > { %v837_v24 = vsel %vm836_vm8, %v779_v19, %v775_v20 }
 0x277   : > { %v731_v5 = vpop.xlane.xlu0 %730  ;;  %v839_v33 = vsel %vm838_vm9, %v783_v28, %v837_v24 }
 0x278   : > { %v787_v26 = vrot.slane %v731_v5, %v2613_v17 }
 0x27a   : > { %v841_v34 = vsel %vm840_vm10, %v787_v26, %v839_v33 }
 0x27b   : > { %v737_v9 = vpop.xlane.xlu0 %736 }
 0x27c   : > { %v799_v43 = vrot.slane %v737_v9, %v2613_v17 }
 0x27f   : > { %v745_v10 = vpop.xlane.xlu1 %744  ;;  %v733_v11 = vpop.xlane.xlu0 %732 }
 0x280   : > { %v791_v27 = vrot.slane %v733_v11, %v2613_v17  ;;  %v815_v30 = vrot.slane %v745_v10, %v2613_v17 }
 0x282   : > { %v843_v37 = vsel %vm842_vm11, %v791_v27, %v841_v34 }
 0x283   : > { %v747_v13 = vpop.xlane.xlu1 %746  ;;  %v735_v14 = vpop.xlane.xlu0 %734 }
 0x284   : > { %v795_v31 = vrot.slane %v735_v14, %v2613_v17  ;;  %v819_v38 = vrot.slane %v747_v13, %v2613_v17 }
 0x286   : > { %v845_v40 = vsel %vm844_vm12, %v795_v31, %v843_v37 }
 0x287   : > { %v743_v15 = vpop.xlane.xlu1 %742  ;;  %v741_v18 = vpop.xlane.xlu0 %740  ;;  %v847_v60 = vsel %vm846_vm13, %v799_v43, %v845_v40 }
 0x288   : > { %v811_v21 = vrot.slane %v743_v15, %v2613_v17  ;;  %v807_v22 = vrot.slane %v741_v18, %v2613_v17 }
 0x28a   : > { %v850_v29 = vsel %vm836_vm8, %v811_v21, %v807_v22 }
 0x28b   : > { %v753_v23 = vpop.xlane.xlu1 %752  ;;  %v739_v25 = vpop.xlane.xlu0 %738  ;;  %v851_v35 = vsel %vm838_vm9, %v815_v30, %v850_v29 }
 0x28c   : > { %v803_v41 = vrot.slane %v739_v25, %v2613_v17  ;;  %v852_v44 = vsel %vm840_vm10, %v819_v38, %v851_v35  ;;  %v831_v50 = vrot.slane %v753_v23, %v2613_v17 }
 0x28e   : > { %v849_v1 = vsel %vm848_vm14, %v803_v41, %v847_v60 }
 0x28f   : > { %v749_v32 = vpop.xlane.xlu1 %748  ;;  %v755_v39 = vpop.xlane.xlu0 %754 }
 0x290   : > { %v823_v36 = vrot.slane %v749_v32, %v2613_v17  ;;  %v835_v54 = vrot.slane %v755_v39, %v2613_v17 }
 0x292   : > { %v853_v51 = vsel %vm842_vm11, %v823_v36, %v852_v44 }
 0x293   : > { %v751_v42 = vpop.xlane.xlu1 %750  ;;  %v701_v5 = vpop.xlane.xlu0 %700 }
 0x294   : > { %v827_v47 = vrot.slane %v751_v42, %v2613_v17 }
 0x296   : > { %v854_v57 = vsel %vm844_vm12, %v827_v47, %v853_v51 }
 0x297   : > { %v855_v61 = vsel %vm846_vm13, %v831_v50, %v854_v57  ;;  %v699_v0 = vpop.xlane.xlu1 %698  ;;  %v914_v22 = vpop.xlane.xlu0 %913 }
 0x298   : > { %v856_v4 = vsel %vm848_vm14, %v835_v54, %v855_v61  ;;  %v859_v8 = vadd.f32 %v849_v1, %v699_v0  ;;  %v944_v32 = vadd.f32 1.0, %v914_v22 }
 0x299   : > { %v860_v9 = vadd.f32 %v856_v4, %v701_v5 }
 0x29a   : > { %v861_v10 = vmax.f32 %v859_v8, 0.0 }
 0x29b   : > { %v862_v11 = vmax.f32 %v860_v9, 0.0  ;;  %v912_v21 = vpop.xlane.xlu1 %911  ;;  %v928_v25 = vpop.xlane.xlu0 %927 }
 0x29c   : > { %v863_v13 = vmul.f32 1.442695, %v861_v10  ;;  %v943_v33 = vadd.f32 1.0, %v912_v21  ;;  %v951_v34 = vadd.f32 1.0, %v928_v25 }
 0x29d   : > { %v865_v14 = vmul.f32 1.442695, %v862_v11 }
 0x29e   : > { %2037 = vpow2.f32 %v863_v13 }
 0x29f   : > { %2039 = vpow2.f32 %v865_v14  ;;  %v916_v23 = vpop.xlane.xlu1 %915  ;;  %v918_v26 = vpop.xlane.xlu0 %917 }
 0x2a0   : > { %v945_v35 = vadd.f32 1.0, %v916_v23  ;;  %2041 = vrcp.f32 %v944_v32  ;;  %v946_v37 = vadd.f32 1.0, %v918_v26 }
 0x2a1   : > { %2043 = vrcp.f32 %v943_v33 }
 0x2a2   : > { %2045 = vrcp.f32 %v951_v34 }
 0x2a3   : > { %v930_v24 = vpop.xlane.xlu1 %929  ;;  %v920_v27 = vpop.xlane.xlu0 %919  ;;  %2047 = vrcp.f32 %v945_v35 }
 0x2a4   : > { %v952_v39 = vadd.f32 1.0, %v930_v24  ;;  %v947_v40 = vadd.f32 1.0, %v920_v27  ;;  %2049 = vrcp.f32 %v946_v37 }
 0x2a6   : > { %2051 = vrcp.f32 %v952_v39 }
 0x2a7   : > { %v932_v28 = vpop.xlane.xlu1 %931  ;;  %v922_v30 = vpop.xlane.xlu0 %921  ;;  %2053 = vrcp.f32 %v947_v40 }
 0x2a8   : > { %v2645_v15 = vpop.eup %2037  ;;  %v953_v41 = vadd.f32 1.0, %v932_v28  ;;  %v948_v42 = vadd.f32 1.0, %v922_v30 }
 0x2a9   : > { %v2647_v18 = vpop.eup %2039  ;;  %v868_v19 = vsel %vm867_vm15, %v2645_v15, 0.0 }
 0x2aa   : > { %869 = vadd.xlane.f32.xlu1 %v868_v19  ;;  %v871_v20 = vsel %vm867_vm15, %v2647_v18, 0.0  ;;  %2055 = vrcp.f32 %v953_v41  ;;  %v2042_v60 = vpop.eup %2041 }
 0x2ab   : > { %872 = vadd.xlane.f32.xlu0 %v871_v20  ;;  %v934_v29 = vpop.xlane.xlu1 %933  ;;  %v924_v36 = vpop.xlane.xlu0 %923  ;;  %2057 = vrcp.f32 %v948_v42  ;;  %v976_v23 = vmul.f32 8.0, %v2042_v60 }
 0x2ac   : > { %v954_v43 = vadd.f32 1.0, %v934_v29  ;;  %v949_v47 = vadd.f32 1.0, %v924_v36  ;;  %v2044_v0 = vpop.eup %2043 }
 0x2ad   : > { %v2046_v4 = vpop.eup %2045  ;;  %v975_v19 = vmul.f32 8.0, %v2044_v0 }
 0x2ae   : > { %2059 = vrcp.f32 %v954_v43  ;;  %v2048_v5 = vpop.eup %2047  ;;  %v983_v24 = vmul.f32 8.0, %v2046_v4 }
 0x2af   : > { %v936_v31 = vpop.xlane.xlu1 %935  ;;  %v926_v44 = vpop.xlane.xlu0 %925  ;;  %2061 = vrcp.f32 %v949_v47  ;;  %v977_v21 = vmul.f32 8.0, %v2048_v5  ;;  %v1010_v27 = vrot.slane %v975_v19, %v2613_v17 }
 0x2b0   : > { %v955_v51 = vadd.f32 1.0, %v936_v31  ;;  %v950_v61 = vadd.f32 1.0, %v926_v44  ;;  %v2050_v8 = vpop.eup %2049  ;;  %v1042_v41 = vrot.slane %v983_v24, %v2613_v17 }
 0x2b1   : > { %v2052_v10 = vpop.eup %2051  ;;  %v978_v29 = vmul.f32 8.0, %v2050_v8  ;;  %v1018_v33 = vrot.slane %v977_v21, %v2613_v17 }
 0x2b2   : > { %2063 = vrcp.f32 %v955_v51  ;;  %v2054_v11 = vpop.eup %2053  ;;  %v984_v26 = vmul.f32 8.0, %v2052_v10 }
 0x2b3   : > { %v938_v38 = vpop.xlane.xlu1 %937  ;;  %v942_v1 = vpop.xlane.xlu0 %941  ;;  %v979_v34 = vmul.f32 8.0, %v2054_v11 }
 0x2b4   : > { %v956_v54 = vadd.f32 1.0, %v938_v38  ;;  %v958_v9 = vadd.f32 1.0, %v942_v1  ;;  %v2056_v13 = vpop.eup %2055  ;;  %v1014_v38 = vrot.slane %v976_v23, %v2613_v17  ;;  %v1046_v42 = vrot.slane %v984_v26, %v2613_v17 }
 0x2b5   : > { %v2058_v14 = vpop.eup %2057  ;;  %v985_v30 = vmul.f32 8.0, %v2056_v13  ;;  %v1026_v60 = vrot.slane %v979_v34, %v2613_v17 }
 0x2b6   : > { %2065 = vrcp.f32 %v956_v54  ;;  %v980_v39 = vmul.f32 8.0, %v2058_v14  ;;  %v1071_v47 = vsel %vm836_vm8, %v1014_v38, %v1010_v27  ;;  %v1078_v8 = vsel %vm836_vm8, %v1046_v42, %v1042_v41 }
 0x2b7   : > { %v940_v50 = vpop.xlane.xlu1 %939  ;;  %v1050_v51 = vrot.slane %v985_v30, %v2613_v17 }
 0x2b8   : > { %v957_v57 = vadd.f32 1.0, %v940_v50  ;;  %v2060_v20 = vpop.eup %2059  ;;  %v1022_v50 = vrot.slane %v978_v29, %v2613_v17  ;;  %v1030_v4 = vrot.slane %v980_v39, %v2613_v17 }
 0x2b9   : > { %v2062_v22 = vpop.eup %2061  ;;  %v986_v35 = vmul.f32 8.0, %v2060_v20  ;;  %v1079_v13 = vsel %vm838_vm9, %v1050_v51, %v1078_v8 }
 0x2ba   : > { %2067 = vrcp.f32 %v957_v57  ;;  %v981_v43 = vmul.f32 8.0, %v2062_v22  ;;  %v1072_v57 = vsel %vm838_vm9, %v1018_v33, %v1071_v47  ;;  %v1348_v47 = vld [vmem:[%s2927_s6 + $0x10] sm:$0xff] }
 0x2bb   : > { %2069 = vrcp.f32 %v950_v61  ;;  %v1054_v61 = vrot.slane %v986_v35, %v2613_v17  ;;  %v1073_v11 = vsel %vm840_vm10, %v1022_v50, %v1072_v57  ;;  %v1349_v50 = vld [vmem:[%s2927_s6 + $0x18] sm:$0xff]  ;;  %v1136_v57 = vsub.s32 4, %v2609_v12 }
 0x2bc   : > { %2071 = vrcp.f32 %v958_v9  ;;  %v2064_v25 = vpop.eup %2063  ;;  %v1034_v9 = vrot.slane %v981_v43, %v2613_v17  ;;  %v1074_v19 = vsel %vm842_vm11, %v1026_v60, %v1073_v11  ;;  %v1129_v43 = vsub.s32 3, %v2609_v12 }
 0x2bd   : > { %v987_v40 = vmul.f32 8.0, %v2064_v25  ;;  %v1080_v20 = vsel %vm840_vm10, %v1054_v61, %v1079_v13  ;;  %v1075_v23 = vsel %vm844_vm12, %v1030_v4, %v1074_v19  ;;  %v1890_v60 = vpack.c.bf16 %v1349_v50, %v1348_v47  ;;  %v1350_v61 = vld [vmem:[%s2927_s6 + $0x20] sm:$0xff] }
 0x2be   : > { %v1076_v26 = vsel %vm846_vm13, %v1034_v9, %v1075_v23  ;;  %v1352_v9 = vld [vmem:[%s2927_s6 + $0x30] sm:$0xff] }
 0x2bf   : > { %v1058_v5 = vrot.slane %v987_v40, %v2613_v17  ;;  %v1122_v40 = vsub.s32 2, %v2609_v12 }
 0x2c0   : > { %v2066_v28 = vpop.eup %2065 }
 0x2c1   : > { %v988_v44 = vmul.f32 8.0, %v2066_v28  ;;  %v1081_v25 = vsel %vm842_vm11, %v1058_v5, %v1080_v20  ;;  %v1143_v5 = vsub.s32 5, %v2609_v12  ;;  %v1354_v20 = vld [vmem:[%s2927_s6 + $0x40] sm:$0xff] }
 0x2c3   : > { %v1062_v10 = vrot.slane %v988_v44, %v2613_v17 }
 0x2c4   : > { %v2068_v32 = vpop.eup %2067 }
 0x2c5   : > { %v2070_v37 = vpop.eup %2069  ;;  %v989_v54 = vmul.f32 8.0, %v2068_v32  ;;  %v1082_v28 = vsel %vm844_vm12, %v1062_v10, %v1081_v25  ;;  %v1108_v32 = vsub.s32 0, %v2609_v12  ;;  %v1353_v10 = vld [vmem:[%s2927_s6 + $0x38] sm:$0xff] }
 0x2c6   : > { %v982_v0 = vmul.f32 8.0, %v2070_v37  ;;  %v2072_v1 = vpop.eup %2071  ;;  %v1898_v19 = vpack.c.bf16 %v1353_v10, %v1352_v9 }
 0x2c7   : > { %v1066_v14 = vrot.slane %v989_v54, %v2613_v17  ;;  %v990_v22 = vmul.f32 8.0, %v2072_v1 }
 0x2c8   : > { %v1038_v21 = vrot.slane %v982_v0, %v2613_v17  ;;  %v1351_v0 = vld [vmem:[%s2927_s6 + $0x28] sm:$0xff] }
 0x2c9   : > { %v1083_v29 = vsel %vm846_vm13, %v1066_v14, %v1082_v28  ;;  %v1070_v34 = vrot.slane %v990_v22, %v2613_v17  ;;  %v1346_v17 = vld [vmem:[%s2927_s6] sm:$0xff]  ;;  %v1894_v8 = vpack.c.bf16 %v1351_v0, %v1350_v61  ;;  %v1150_v14 = vsub.s32 6, %v2609_v12 }
 0x2ca   : > { %v1077_v33 = vsel %vm848_vm14, %v1038_v21, %v1076_v26  ;;  %v1355_v21 = vld [vmem:[%s2927_s6 + $0x48] sm:$0xff]  ;;  %v1357_v26 = vld [vmem:[%s2927_s6 + $0x58] sm:$0xff] }
 0x2cb   : > { %v1084_v37 = vsel %vm848_vm14, %v1070_v34, %v1083_v29  ;;  %v1902_v25 = vpack.c.bf16 %v1355_v21, %v1354_v20  ;;  %v1157_v29 = vsub.s32 7, %v2609_v12 }
 0x337   : > { %v870_v31 = vpop.xlane.xlu1 %869 }
 0x338   : > { %2073 = vrcp.f32 %v870_v31  ;;  %v873_v36 = vpop.xlane.xlu0 %872  ;;  %v1115_v31 = vsub.s32 1, %v2609_v12  ;;  %v1360_v12 = vld [vmem:[%s2927_s6 + $0x70] sm:$0xff] }
 0x339   : > { %2075 = vrcp.f32 %v873_v36 }
 0x342   : > { %v2074_v24 = vpop.eup %2073 }
 0x343   : > { %v2076_v27 = vpop.eup %2075  ;;  %v876_v30 = vmul.f32 %v2074_v24, %v2645_v15  ;;  %v1356_v24 = vld [vmem:[%s2927_s6 + $0x50] sm:$0xff] }
 0x344   : > { %v877_v35 = vmul.f32 %v2076_v27, %v2647_v18  ;;  %v1347_v18 = vld [vmem:[%s2927_s6 + $0x8] sm:$0xff] }
 0x345   : > { %v2684_v36 = vmul.f32 %v1077_v33, %v876_v30  ;;  %v1886_v44 = vpack.c.bf16 %v1347_v18, %v1346_v17  ;;  %v1906_v30 = vpack.c.bf16 %v1357_v26, %v1356_v24  ;;  %v1359_v33 = vld [vmem:[%s2927_s6 + $0x68] sm:$0xff] }
 0x346   : > { %v2687_v38 = vmul.f32 %v1084_v37, %v877_v35 }
 0x347   : > { %v1116_v39 = vrot.slane %v2684_v36, %v1115_v31  ;;  %v1109_v15 = vrot.slane %v2684_v36, %v1108_v32  ;;  %v1123_v41 = vrot.slane %v2684_v36, %v1122_v40  ;;  %1887 = vmatprep.subr.bf16.mxu1 %v1886_v44  ;;  %v1130_v51 = vrot.slane %v2684_v36, %v1129_v43 }
 0x348   : > { %v1172_v42 = vrot.slane %v2687_v38, %v1115_v31  ;;  %v1179_v54 = vrot.slane %v2687_v38, %v1122_v40  ;;  %1889 = vmatpush3.bf16.msra.mxu1 %v1886_v44  ;;  %v1137_v1 = vrot.slane %v2684_v36, %v1136_v57  ;;  %v1186_v4 = vrot.slane %v2687_v38, %v1129_v43  ;;  %v1358_v31 = vld [vmem:[%s2927_s6 + $0x60] sm:$0xff] }
 0x349   : > { %1118 = vbcast.lane.b32.xlu0 %v1116_v39, 256  ;;  %1111 = vbcast.lane.b32.xlu1 %v1109_v15, 256  ;;  %v1144_v11 = vrot.slane %v2684_v36, %v1143_v5  ;;  %v1193_v13 = vrot.slane %v2687_v38, %v1136_v57  ;;  %v1151_v22 = vrot.slane %v2684_v36, %v1150_v14  ;;  %v1331_v15 = vld [vmem:[%s2926_s5 + $0x8] sm:$0xff] }
 0x34a   : > { %1891 = vmatprep.subr.bf16.mxu1 %v1890_v60  ;;  %v1200_v23 = vrot.slane %v2687_v38, %v1143_v5  ;;  %v1207_v28 = vrot.slane %v2687_v38, %v1150_v14  ;;  %v1165_v27 = vrot.slane %v2687_v38, %v1108_v32  ;;  %v1158_v34 = vrot.slane %v2684_v36, %v1157_v29  ;;  %v1361_v32 = vld [vmem:[%s2927_s6 + $0x78] sm:$0xff]  ;;  %v1330_v36 = vld [vmem:[%s2926_s5] sm:$0xff] }
 0x34b   : > { %v1910_v35 = vpack.c.bf16 %v1359_v33, %v1358_v31  ;;  %v1214_v37 = vrot.slane %v2687_v38, %v1157_v29  ;;  %v1914_v39 = vpack.c.bf16 %v1361_v32, %v1360_v12  ;;  %v2769_v40 = vpack.c.bf16 %v1331_v15, %v1330_v36  ;;  %v2775_v38 = vld [vmem:[%s2929_s8] sm:$0xff] }
 0x34c   : > { %1893 = vmatpush3.bf16.msra.mxu1 %v1890_v60  ;;  %v1090_v17 = vmul.f32 %v2775_v38, %v2535_v46  ;;  %v1091_v18 = vmul.f32 %v2775_v38, %v2540_v49  ;;  %v1093_v49 = vmul.f32 %v2538_v48, %v2775_v38  ;;  %v1095_v31 = vmul.f32 %v2775_v38, %v2551_v56 }
 0x34d   : > { %1125 = vbcast.lane.b32.xlu1 %v1123_v41, 256  ;;  %1174 = vbcast.lane.b32.xlu0 %v1172_v42, 256  ;;  %v1096_v56 = vmul.f32 %v2544_v52, %v2775_v38  ;;  %v1098_v52 = vmul.f32 %v2775_v38, %v2556_v59 }
 0x34e   : > { %1895 = vmatprep.subr.bf16.mxu1 %v1894_v8 }
 0x350   : > { %1897 = vmatpush3.bf16.msra.mxu1 %v1894_v8 }
 0x351   : > { %1132 = vbcast.lane.b32.xlu1 %v1130_v51, 256  ;;  %1181 = vbcast.lane.b32.xlu0 %v1179_v54, 256  ;;  %v1092_v51 = vmul.f32 %v2533_v45, %v2775_v38 }
 0x352   : > { %1899 = vmatprep.subr.bf16.mxu1 %v1898_v19 }
 0x354   : > { %1901 = vmatpush3.bf16.msra.mxu1 %v1898_v19 }
 0x355   : > { %1139 = vbcast.lane.b32.xlu1 %v1137_v1, 256  ;;  %1188 = vbcast.lane.b32.xlu0 %v1186_v4, 256 }
 0x356   : > { %1903 = vmatprep.subr.bf16.mxu1 %v1902_v25 }
 0x358   : > { %1905 = vmatpush3.bf16.msra.mxu1 %v1902_v25 }
 0x359   : > { %1146 = vbcast.lane.b32.xlu1 %v1144_v11, 256  ;;  %1195 = vbcast.lane.b32.xlu0 %v1193_v13, 256  ;;  %v1099_v13 = vmul.f32 %v2775_v38, %v2562_v63  ;;  %v1101_v63 = vmul.f32 %v2560_v62, %v2775_v38 }
 0x35a   : > { %1907 = vmatprep.subr.bf16.mxu1 %v1906_v30 }
 0x35c   : > { %1909 = vmatpush3.bf16.msra.mxu1 %v1906_v30 }
 0x35d   : > { %1153 = vbcast.lane.b32.xlu1 %v1151_v22, 256  ;;  %1202 = vbcast.lane.b32.xlu0 %v1200_v23, 256  ;;  %v1094_v23 = vmul.f32 %v2775_v38, %v2546_v53 }
 0x35e   : > { %1911 = vmatprep.subr.bf16.mxu1 %v1910_v35 }
 0x360   : > { %1913 = vmatpush3.bf16.msra.mxu1 %v1910_v35  ;;  %v1102_v35 = vmul.f32 %v2775_v38, %v2568_v3 }
 0x361   : > { %1209 = vbcast.lane.b32.xlu0 %v1207_v28, 256  ;;  %1167 = vbcast.lane.b32.xlu1 %v1165_v27, 256  ;;  %v1100_v27 = vmul.f32 %v2554_v58, %v2775_v38 }
 0x362   : > { %1915 = vmatprep.subr.bf16.mxu1 %v1914_v39 }
 0x364   : > { %1917 = vmatpush3.bf16.msra.mxu1 %v1914_v39 }
 0x365   : > { %1160 = vbcast.lane.b32.xlu1 %v1158_v34, 256  ;;  %1919 = vmatprep.subr.bf16.mxu1 %v2769_v40 }
 0x369   : > { %1216 = vbcast.lane.b32.xlu1 %v1214_v37, 256 }
 0x3bb   : > { %v1112_v41 = vpop.permute.xlu1 %1111  ;;  %v1119_v42 = vpop.permute.xlu0 %1118 }
 0x3bc   : > { %v1218_v43 = vmul.f32 %v1112_v41, %v1090_v17  ;;  %v1219_v44 = vmul.f32 %v1119_v42, %v1091_v18  ;;  %v1103_v42 = vmul.f32 %v2775_v38, %v2574_v7 }
 0x3be   : > { %v1234_v47 = vrot.slane %v1218_v43, 4  ;;  %v1240_v50 = vrot.slane %v1219_v44, 4 }
 0x3bf   : > { %v1126_v54 = vpop.permute.xlu1 %1125  ;;  %v1175_v57 = vpop.permute.xlu0 %1174 }
 0x3c0   : > { %v1235_v60 = vadd.f32 %v1234_v47, %v1218_v43  ;;  %v1241_v61 = vadd.f32 %v1240_v50, %v1219_v44  ;;  %v1220_v0 = vmul.f32 %v1126_v54, %v1092_v51  ;;  %v1227_v21 = vmul.f32 %v1175_v57, %v1099_v13 }
 0x3c2   : > { %v1236_v1 = vrot.slane %v1235_v60, 2  ;;  %v1242_v4 = vrot.slane %v1241_v61, 2  ;;  %v1246_v46 = vrot.slane %v1220_v0, 4  ;;  %v1288_v12 = vrot.slane %v1227_v21, 4 }
 0x3c3   : > { %v1133_v5 = vpop.permute.xlu1 %1132  ;;  %v1182_v8 = vpop.permute.xlu0 %1181 }
 0x3c4   : > { %v1237_v9 = vadd.f32 %v1236_v1, %v1235_v60  ;;  %v1243_v10 = vadd.f32 %v1242_v4, %v1241_v61  ;;  %v1247_v11 = vadd.f32 %v1246_v46, %v1220_v0  ;;  %v1221_v45 = vmul.f32 %v1133_v5, %v1093_v49 }
 0x3c5   : > { %v1228_v53 = vmul.f32 %v1182_v8, %v1100_v27  ;;  %v1289_v47 = vadd.f32 %v1288_v12, %v1227_v21 }
 0x3c6   : > { %v1238_v14 = vrot.slane %v1237_v9, 1  ;;  %v1244_v19 = vrot.slane %v1243_v10, 1  ;;  %v1248_v20 = vrot.slane %v1247_v11, 2  ;;  %v1252_v22 = vrot.slane %v1221_v45, 4 }
 0x3c7   : > { %v1140_v25 = vpop.permute.xlu1 %1139  ;;  %v1189_v24 = vpop.permute.xlu0 %1188  ;;  %v1294_v43 = vrot.slane %v1228_v53, 4 }
 0x3c8   : > { %v1239_v48 = vadd.f32 %v1238_v14, %v1237_v9  ;;  %v1245_v26 = vadd.f32 %v1244_v19, %v1243_v10  ;;  %v1249_v28 = vadd.f32 %v1248_v20, %v1247_v11  ;;  %v1253_v29 = vadd.f32 %v1252_v22, %v1221_v45 }
 0x3c9   : > { %v1222_v30 = vmul.f32 %v1140_v25, %v1094_v23  ;;  %v1229_v39 = vmul.f32 %v1189_v24, %v1101_v63  ;;  %v1295_v7 = vadd.f32 %v1294_v43, %v1228_v53  ;;  %v1104_v45 = vmul.f32 %v2566_v2, %v2775_v38 }
 0x3ca   : > { %v1378_v33 = vsel %vm836_vm8, %v1245_v26, %v1239_v48  ;;  %v1250_v34 = vrot.slane %v1249_v28, 1  ;;  %v1254_v32 = vrot.slane %v1253_v29, 2  ;;  %v1290_v20 = vrot.slane %v1289_v47, 2 }
 0x3cb   : > { %v1258_v37 = vrot.slane %v1222_v30, 4  ;;  %v1147_v58 = vpop.permute.xlu1 %1146  ;;  %v1196_v36 = vpop.permute.xlu0 %1195  ;;  %v1300_v54 = vrot.slane %v1229_v39, 4  ;;  %v1296_v26 = vrot.slane %v1295_v7, 2 }
 0x3cc   : > { %v1251_v15 = vadd.f32 %v1250_v34, %v1249_v28  ;;  %v1223_v17 = vmul.f32 %v1147_v58, %v1095_v31  ;;  %v1230_v18 = vmul.f32 %v1196_v36, %v1102_v35  ;;  %v1255_v62 = vadd.f32 %v1254_v32, %v1253_v29 }
 0x3cd   : > { %v1259_v41 = vadd.f32 %v1258_v37, %v1222_v30  ;;  %v1301_v11 = vadd.f32 %v1300_v54, %v1229_v39  ;;  %v1097_v29 = vmul.f32 %v2549_v55, %v2775_v38  ;;  %v1291_v34 = vadd.f32 %v1290_v20, %v1289_v47 }
 0x3ce   : > { %v1264_v44 = vrot.slane %v1223_v17, 4  ;;  %v1379_v3 = vsel %vm838_vm9, %v1251_v15, %v1378_v33  ;;  %v1256_v50 = vrot.slane %v1255_v62, 1  ;;  %v1306_v0 = vrot.slane %v1230_v18, 4 }
 0x3cf   : > { %v1260_v51 = vrot.slane %v1259_v41, 2  ;;  %v1154_v57 = vpop.permute.xlu1 %1153  ;;  %v1203_v60 = vpop.permute.xlu0 %1202  ;;  %v1302_v30 = vrot.slane %v1301_v11, 2  ;;  %v1297_v36 = vadd.f32 %v1296_v26, %v1295_v7  ;;  %v1292_v47 = vrot.slane %v1291_v34, 1  ;;  %v1333_v26 = vld [vmem:[%s2926_s5 + $0x18] sm:$0xff] }
 0x3d0   : > { %v1265_v61 = vadd.f32 %v1264_v44, %v1223_v17  ;;  %v1224_v1 = vmul.f32 %v1154_v57, %v1096_v56  ;;  %v1231_v4 = vmul.f32 %v1203_v60, %v1103_v42  ;;  %v1257_v46 = vadd.f32 %v1256_v50, %v1255_v62 }
 0x3d1   : > { %v1261_v49 = vadd.f32 %v1260_v51, %v1259_v41  ;;  %v1307_v22 = vadd.f32 %v1306_v0, %v1230_v18  ;;  %v1105_v17 = vmul.f32 %v2572_v6, %v2775_v38  ;;  %v1303_v18 = vadd.f32 %v1302_v30, %v1301_v11 }
 0x3d2   : > { %v1266_v5 = vrot.slane %v1265_v61, 2  ;;  %v1270_v8 = vrot.slane %v1224_v1, 4  ;;  %v1312_v9 = vrot.slane %v1231_v4, 4  ;;  %v1380_v19 = vsel %vm840_vm10, %v1257_v46, %v1379_v3 }
 0x3d3   : > { %v1262_v10 = vrot.slane %v1261_v49, 1  ;;  %v1168_v13 = vpop.permute.xlu1 %1167  ;;  %v1210_v14 = vpop.permute.xlu0 %1209  ;;  %v1308_v35 = vrot.slane %v1307_v22, 2  ;;  %v1298_v57 = vrot.slane %v1297_v36, 1  ;;  %v1304_v6 = vrot.slane %v1303_v18, 1 }
 0x3d4   : > { %v1267_v21 = vadd.f32 %v1266_v5, %v1265_v61  ;;  %v1271_v23 = vadd.f32 %v1270_v8, %v1224_v1  ;;  %v1313_v24 = vadd.f32 %v1312_v9, %v1231_v4  ;;  %v1226_v59 = vmul.f32 %v1168_v13, %v1098_v52 }
 0x3d5   : > { %v1263_v25 = vadd.f32 %v1262_v10, %v1261_v49  ;;  %v1232_v48 = vmul.f32 %v1210_v14, %v1104_v45  ;;  %v1309_v43 = vadd.f32 %v1308_v35, %v1307_v22  ;;  %v1293_v49 = vadd.f32 %v1292_v47, %v1291_v34  ;;  %v1337_v35 = vld [vmem:[%s2926_s5 + $0x38] sm:$0xff] }
 0x3d6   : > { %v1268_v28 = vrot.slane %v1267_v21, 1  ;;  %v1272_v27 = vrot.slane %v1271_v23, 2  ;;  %v1282_v63 = vrot.slane %v1226_v59, 4  ;;  %v1314_v32 = vrot.slane %v1313_v24, 2 }
 0x3d7   : > { %v1318_v2 = vrot.slane %v1232_v48, 4  ;;  %v1161_v31 = vpop.permute.xlu1 %1160  ;;  %v1381_v33 = vsel %vm842_vm11, %v1263_v25, %v1380_v19  ;;  %v1310_v4 = vrot.slane %v1309_v43, 1  ;;  %v1299_v8 = vadd.f32 %v1298_v57, %v1297_v36  ;;  %v1342_v36 = vld [vmem:[%s2926_s5 + $0x60] sm:$0xff] }
 0x3d8   : > { %v1269_v53 = vadd.f32 %v1268_v28, %v1267_v21  ;;  %v1273_v12 = vadd.f32 %v1272_v27, %v1271_v23  ;;  %v1283_v37 = vadd.f32 %v1282_v63, %v1226_v59  ;;  %v1225_v58 = vmul.f32 %v1161_v31, %v1097_v29  ;;  %v1334_v31 = vld [vmem:[%s2926_s5 + $0x20] sm:$0xff] }
 0x3d9   : > { %v1319_v39 = vadd.f32 %v1318_v2, %v1232_v48  ;;  %v1315_v50 = vadd.f32 %v1314_v32, %v1313_v24  ;;  %v1305_v11 = vadd.f32 %v1304_v6, %v1303_v18  ;;  %v1311_v14 = vadd.f32 %v1310_v4, %v1309_v43  ;;  %v1332_v48 = vld [vmem:[%s2926_s5 + $0x10] sm:$0xff]  ;;  %v1338_v32 = vld [vmem:[%s2926_s5 + $0x40] sm:$0xff]  ;;  %v1345_v18 = vld [vmem:[%s2926_s5 + $0x78] sm:$0xff] }
 0x3da   : > { %v1274_v15 = vrot.slane %v1273_v12, 1  ;;  %v1382_v55 = vsel %vm844_vm12, %v1269_v53, %v1381_v33  ;;  %v1284_v62 = vrot.slane %v1283_v37, 2  ;;  %v1276_v56 = vrot.slane %v1225_v58, 4  ;;  %v1335_v33 = vld [vmem:[%s2926_s5 + $0x28] sm:$0xff]  ;;  %v1336_v53 = vld [vmem:[%s2926_s5 + $0x30] sm:$0xff] }
 0x3db   : > { %v1320_v41 = vrot.slane %v1319_v39, 2  ;;  %v1217_v42 = vpop.permute.xlu1 %1216  ;;  %v1316_v52 = vrot.slane %v1315_v50, 1  ;;  %v1922_v63 = vpack.c.bf16 %v1333_v26, %v1332_v48  ;;  %v1926_v34 = vpack.c.bf16 %v1335_v33, %v1334_v31 }
 0x3dc   : > { %v1233_v44 = vmul.f32 %v1217_v42, %v1105_v17  ;;  %v1275_v3 = vadd.f32 %v1274_v15, %v1273_v12  ;;  %v1285_v51 = vadd.f32 %v1284_v62, %v1283_v37  ;;  %v1277_v54 = vadd.f32 %v1276_v56, %v1225_v58  ;;  %v1340_v37 = vld [vmem:[%s2926_s5 + $0x50] sm:$0xff]  ;;  %v1343_v15 = vld [vmem:[%s2926_s5 + $0x68] sm:$0xff] }
 0x3dd   : > { %v1321_v60 = vadd.f32 %v1320_v41, %v1319_v39  ;;  %v1317_v21 = vadd.f32 %v1316_v52, %v1315_v50  ;;  %v1930_v12 = vpack.c.bf16 %v1337_v35, %v1336_v53  ;;  %v1341_v39 = vld [vmem:[%s2926_s5 + $0x58] sm:$0xff]  ;;  %v1942_v17 = vpack.c.bf16 %v1343_v15, %v1342_v36 }
 0x3de   : > { %v1324_v61 = vrot.slane %v1233_v44, 4  ;;  %v1383_v0 = vsel %vm846_vm13, %v1275_v3, %v1382_v55  ;;  %v1286_v38 = vrot.slane %v1285_v51, 1  ;;  %v1278_v1 = vrot.slane %v1277_v54, 2  ;;  %v1344_v55 = vld [vmem:[%s2926_s5 + $0x70] sm:$0xff]  ;;  %v2077_v41 = vld [vmem:[%s2482_s27 + $0x8] sm:$0xff]  ;;  %s2249_s27 = smov [#allocation8]  }
 0x3df   : > { %v1322_v9 = vrot.slane %v1321_v60, 1  ;;  %v1938_v58 = vpack.c.bf16 %v1341_v39, %v1340_v37  ;;  %v1946_v62 = vpack.c.bf16 %v1345_v18, %v1344_v55  ;;  %s2168_s4 = sshll.u32 %s2249_s27, 4  ;;  %s2169_s4 = int_to_ptr.vmem [resolvable:$false] %s2168_s4 }
 0x3e0   : > { %v1325_v46 = vadd.f32 %v1324_v61, %v1233_v44  ;;  %v1287_v7 = vadd.f32 %v1286_v38, %v1285_v51  ;;  %v1279_v5 = vadd.f32 %v1278_v1, %v1277_v54  ;;  %s2170_s16 = scalar_lea.vmem %s2169_s4, 512  ;;  %p2171_p6 = scmp.lt.s32.totalorder %s2870_s25, %s2169_s4 }
 0x3e1   : > { %v1323_v25 = vadd.f32 %v1322_v9, %v1321_v60  ;;  %p2172_p12 = scmp.lt.s32.totalorder %s2170_s16, %s2164_s13 }
 0x3e2   : > { %v1326_v10 = vrot.slane %v1325_v46, 2  ;;  %v1385_v13 = vsel %vm836_vm8, %v1293_v49, %v1287_v7  ;;  %v1280_v45 = vrot.slane %v1279_v5, 1 }
 0x3e3   : > { %v1386_v20 = vsel %vm838_vm9, %v1299_v8, %v1385_v13  ;;  %p2173_p13 = por %p2172_p12, %p2171_p6 }
 0x3e4   : > { %v1327_v19 = vadd.f32 %v1326_v10, %v1325_v46  ;;  %v1281_v22 = vadd.f32 %v1280_v45, %v1279_v5  ;;  %v1387_v23 = vsel %vm840_vm10, %v1305_v11, %v1386_v20 }
 0x3e5   : > { %v1388_v59 = vsel %vm842_vm11, %v1311_v14, %v1387_v23  ;;  %p2174_p1 = pnand %p2173_p13, %p2167_p7 }
 0x3e6   : > { %v1328_v24 = vrot.slane %v1327_v19, 1  ;;  %v1384_v28 = vsel %vm848_vm14, %v1281_v22, %v1383_v0  ;;  %v1389_v27 = vsel %vm844_vm12, %v1317_v21, %v1388_v59 }
 0x3e7   : > { %1848 = vmatprep.mubr.f32.mxu1 %v1384_v28  ;;  %v1390_v30 = vsel %vm846_vm13, %v1323_v25, %v1389_v27 }
 0x3e8   : > { %v1329_v29 = vadd.f32 %v1328_v24, %v1327_v19 }
 0x3ea   : > { %v1391_v2 = vsel %vm848_vm14, %v1329_v29, %v1390_v30 }
 0x3eb   : > { %1849 = vmatmul.mubr.f32.vlgmr.msra.gmra.mrb[0].mxu1 %v1391_v2 }
 0x3ec   : > { %1921 = vmatpush3.bf16.msra.mxu1 %v2769_v40  ;;  %1883 = vmatprep.mubr.f32.mxu1 %v2588_v16  ;;  %v1339_v16 = vld [vmem:[%s2926_s5 + $0x48] sm:$0xff] }
 0x3ed   : > { %1923 = vmatprep.subr.bf16.mxu1 %v1922_v63  ;;  %v1934_v40 = vpack.c.bf16 %v1339_v16, %v1338_v32 }
 0x3f0   : > { %1925 = vmatpush3.bf16.msra.mxu1 %v1922_v63 }
 0x3f1   : > { %1927 = vmatprep.subr.bf16.mxu1 %v1926_v34 }
 0x3f4   : > { %1929 = vmatpush3.bf16.msra.mxu1 %v1926_v34 }
 0x3f5   : > { %1931 = vmatprep.subr.bf16.mxu1 %v1930_v12 }
 0x3f8   : > { %1933 = vmatpush3.bf16.msra.mxu1 %v1930_v12 }
 0x3f9   : > { %1935 = vmatprep.subr.bf16.mxu1 %v1934_v40 }
 0x3fc   : > { %1937 = vmatpush3.bf16.msra.mxu1 %v1934_v40 }
 0x3fd   : > { %1939 = vmatprep.subr.bf16.mxu1 %v1938_v58 }
 0x400   : > { %1941 = vmatpush3.bf16.msra.mxu1 %v1938_v58 }
 0x401   : > { %1943 = vmatprep.subr.bf16.mxu1 %v1942_v17 }
 0x404   : > { %1945 = vmatpush3.bf16.msra.mxu1 %v1942_v17 }
 0x405   : > { %1947 = vmatprep.subr.bf16.mxu1 %v1946_v62 }
 0x408   : > { %1949 = vmatpush3.bf16.msra.mxu1 %v1946_v62 }
 0x40b   : > { %1884 = vmatmul.mubr.f32.vlgmr.msra.gmra.mrb[0].mxu1 %v2077_v41 }
 0x4de   : > { %v1885_v56 = vpop.f32.mrb[0].mxu1 }
 0x4df   : > { %v1545_v42 = vmax.f32 %v1885_v56, 0.0  ;;  %v1535_v43 = vpop.f32.mrb[1].mxu1 }
 0x4e0   : > { %v1544_v44 = vmax.f32 %v1535_v43, 0.0 }
 0x4e1   : > { %1547 = vst [vmem:[%s393_s23 + $0x8] sm:$0xff] %v1545_v42 }
 0x4e2   : > { %1546 = vst [vmem:[%s393_s23] sm:$0xff] %v1544_v44 }
 0x4e3   : > { %2177 = shalt.err (!%p2174_p1)
}
 0x4e4   : > { %s2178_s29 = scalar_lea.hbm %s2875_s17, 256  ;;  %s2182_s28 = scalar_lea.hbm %s2963_s20, 512 }
 0x4e5   : > { %p2179_p11 = scmp.ne.s32.totalorder %s2875_s17, %s2178_s29  ;;  %p2183_p8 = scmp.lt.u32.totalorder %s2875_s17, %s2963_s20 }
 0x4e6   : > { %p2184_p4 = scmp.lt.u32.totalorder %s2182_s28, %s2178_s29  ;;  %p2186_p10 = scmp.lt.u32.totalorder %s2178_s29, %s2875_s17 }
 0x4e7   : > { %p2180_p3 = pnand %p2179_p11, %p2964_p2 }
 0x4e8   : > { %p2185_p5 = por %p2184_p4, %p2183_p8 }
 0x4e9   : > { %p2181_p9 = pneg %p2180_p3 }
 0x4ea   : > { %p2187_p0 = por %p2186_p10, %p2185_p5 }
 0x4ec   : > { %p2188_p7 = pnand %p2187_p0, %p2181_p9 }
 0x4ee   : > { %2191 = shalt.err (!%p2188_p7)
}
 0x4ef   : > { %s2250_s9 = smov 128   ;;  %s2251_s23 = smov 8  }
 0x4f0   : > { %1962 = dma.vmem_to_hbm [thread:$0]  (%p2964_p2), %s2870_s25, 256, %s2875_s17, %s2879_s30, %s2250_s9, %s2250_s9, %s2251_s23  }
 0x4f1 PF: > { %s2965_s26 = sld [smem:[#allocation13_spill]]  ;;  %s2966_s22 = sld [smem:[#allocation16_spill]] }
 0x4f2   : > { %p2968_p12 = scmp.ge.s32.totalorder %s2238_s12, 2 }
 0x4f7   : > { %s1577_s15 = sand.u32 1, %s2965_s26   ;;  %p2967_p6 = scmp.ne.s32.totalorder %s2966_s22, 0 }
 0x4f8   : > { %s1578_s13 = scalar_lea.sflag [#allocation4], %s1577_s15 }
 0x4f9   : > { %p1976_p13 = pnand %p2968_p12, %p2967_p6 }
 0x4fb   : > { %2221 = dma.done.wait (!%p1976_p13), %s1578_s13, 256  }
 0x4fc   : > { %2223 = vsyncadd (!%p1976_p13), %s1578_s13, 4294967040  ;;  %s2969_s12 = sld [smem:[#allocation14_spill]]  ;;  %s2970_s27 = sld [smem:[#allocation15_spill]] }
 0x4fd   : > { %s2971_s30 = smov %s2230_s10  ;;  %s2972_s10 = smov %s2234_s11 }
 0x502   : > { %p23_p1 = scmp.ge.s32.totalorder %s2969_s12, 4   ;;  %s2973_s11 = smov %s2970_s27 }
 0x504   :  { %25 = sbr.rel (!%p23_p1) target bundleno = 9 (0x9), region = 113 }
 0x50b   :  { %1583 = vsyncpa [#allocation3], 1 }
 0x50c   :  { %1585 = vsyncpa [#allocation3 + $0x1], 1 }
 0x50d   :  { %1586 = vsyncpa [#allocation6], 1 }
 0x50e   :  { %1588 = vsyncpa [#allocation6 + $0x1], 1 }
 0x50f   :  { %1589 = vsyncpa [#allocation4], 1 }
 0x510   :  { %1591 = vsyncpa [#allocation4 + $0x1], 1 }

</bundles_post_ra>
